<compile_context>
chip_gen: v7x
topology: tpu7x:2x2x1
jax: 0.10.0
libtpu: 0.0.40
codegen_flags: <defaults>
</compile_context>

<pallas_src>
import functools

import jax
import jax.numpy as jnp
from jax.experimental import pallas as pl
from jax.experimental.pallas import tpu as pltpu


# ----------------------------------------------------------------------------
# Pallas kernel
#   grid = (batch_tiles, seq_chunks); seq axis is a reduction ("arbitrary"),
#   batch axis is "parallel".  acc_ref is a per-batch-tile f32 accumulator for
#   the masked sum over the sequence; the head compute (pooler tanh, image fc,
#   fused fc + sigmoid) runs once, at the last sequence chunk.
# ----------------------------------------------------------------------------
def multisolver_kernel(hidden_ref, count_ref, pooled_ref,
                       wpool_ref, bpool_ref,
                       wimg_ref, bhead_ref,
                       wft_ref, wfi_ref, bfc_ref,
                       out_ref, acc_ref):
    k = pl.program_id(1)

    @pl.when(k == 0)
    def _init():
        acc_ref[...] = jnp.zeros_like(acc_ref)

    # ---- text path: masked sum over this sequence chunk (f32 accumulate) ---
    # TODO(synk): pretrained 12-layer BERT encoder not translated; stubbed by
    # masked mean pooling of the embedding-layer output (mask already folded
    # into `hidden` by the wrapper).
    acc_ref[...] += jnp.sum(hidden_ref[...].astype(jnp.float32), axis=1)

    @pl.when(k == pl.num_programs(1) - 1)
    def _finalize():
        # masked mean  (count is pre-clamped to >= 1 in the wrapper)
        inv_count = pl.reciprocal(count_ref[...], approx=True)       # (tb, 1)
        cls_hidden = acc_ref[...] * inv_count                        # (tb, H) f32

        # BERT pooler: dense(H->H) + tanh  -> pooler_output
        text_emb = jnp.tanh(
            jnp.dot(cls_hidden.astype(jnp.bfloat16), wpool_ref[...],
                    preferred_element_type=jnp.float32)
            + bpool_ref[...])                                        # (tb, H) f32

        # ---- image path -----------------------------------------------
        # TODO(synk): pretrained ConvNeXt-tiny trunk not translated; stubbed by
        # patch extraction + global mean pooling (done in the wrapper).  The
        # stub patch-embed matmul and the replaced head.fc = Linear(768,768)
        # are folded into one (Dp, 768) weight: W_img = w_patch @ w_head.
        image_emb = (jnp.dot(pooled_ref[...], wimg_ref[...],
                             preferred_element_type=jnp.float32)
                     + bhead_ref[...])                               # (tb, H) f32

        # ---- fusion: concat([text, image]) -> Linear(2H, 1) -> Sigmoid -----
        # concat folded into the split fc weight rows (passed as (1, H));
        # the N=1 matmul is done as a lane reduce on the VPU/XLU.
        logit = (jnp.sum(text_emb * wft_ref[...], axis=-1, keepdims=True)
                 + jnp.sum(image_emb * wfi_ref[...], axis=-1, keepdims=True)
                 + bfc_ref[...])                                     # (tb, 1)
        out_ref[...] = jax.nn.sigmoid(logit)


# ----------------------------------------------------------------------------
# pallas_call wrapper: batch-tiled, sequence-chunked grid; weights resident
# in VMEM (constant index_map) across the whole grid.
# ----------------------------------------------------------------------------
def multisolver_head_pallas(masked_hidden, count, pooled, hp,
                            tile_b=128, tile_s=256):
    B, S, H = masked_hidden.shape
    Dp = pooled.shape[1]

    tb = min(tile_b, B)
    ts = min(tile_s, S)
    pad_b = (-B) % tb
    pad_s = (-S) % ts
    if pad_b or pad_s:
        # Padded seq rows are zero (mask already applied) -> sum unaffected;
        # padded batch rows get count=1 to avoid div-by-zero, then sliced off.
        masked_hidden = jnp.pad(masked_hidden, ((0, pad_b), (0, pad_s), (0, 0)))
        count = jnp.pad(count, ((0, pad_b), (0, 0)), constant_values=1.0)
        pooled = jnp.pad(pooled, ((0, pad_b), (0, 0)))
    Bp, Sp = B + pad_b, S + pad_s
    grid = (Bp // tb, Sp // ts)

    weights = (hp["w_pool"], hp["b_pool"],
               hp["w_img"], hp["b_head"],
               hp["w_fc_text"], hp["w_fc_img"], hp["b_fc"])

    in_specs = [
        pl.BlockSpec((tb, ts, H), lambda i, k: (i, k, 0)),   # hidden chunk
        pl.BlockSpec((tb, 1), lambda i, k: (i, 0)),          # mask count
        pl.BlockSpec((tb, Dp), lambda i, k: (i, 0)),         # pooled patches
    ] + [
        # weights: constant index_map -> stay resident in VMEM across the grid
        pl.BlockSpec(w.shape, lambda i, k: (0, 0)) for w in weights
    ]

    out = pl.pallas_call(
        multisolver_kernel,
        out_shape=jax.ShapeDtypeStruct((Bp, 1), jnp.float32),
        grid_spec=pltpu.PrefetchScalarGridSpec(
            num_scalar_prefetch=0,
            grid=grid,
            in_specs=in_specs,
            out_specs=pl.BlockSpec((tb, 1), lambda i, k: (i, 0)),
            scratch_shapes=[pltpu.VMEM((tb, H), jnp.float32)],
        ),
        compiler_params=pltpu.CompilerParams(
            dimension_semantics=("parallel", "arbitrary"),
            vmem_limit_bytes=48 * 1024 * 1024),
    )(masked_hidden, count, pooled, *weights)
    return out[:B]


# ----------------------------------------------------------------------------
# Plain-JAX glue: embedding lookup, mask folding, patch extraction / pooling,
# image-path weight folding.
# ----------------------------------------------------------------------------
@functools.partial(jax.jit, static_argnames=("patch_size",))
def multisolver_forward(params, input_ids, attn_mask, token_type_ids,
                        image_input, patch_size=4):
    # Text embedding lookup (word + token-type), as in BERT's embedding layer.
    hidden = (jnp.take(params["word_emb"], input_ids, axis=0)
              + jnp.take(params["type_emb"], token_type_ids, axis=0))   # (B,S,H) f32
    mask = attn_mask.astype(jnp.float32)                                # (B, S)
    masked_hidden = (hidden * mask[:, :, None]).astype(jnp.bfloat16)    # (B,S,H) bf16
    count = jnp.maximum(jnp.sum(mask, axis=1, keepdims=True), 1.0)      # (B, 1) f32

    # Image: NCHW -> (B, P, C*ps*ps) patches, global mean pool over patches.
    B, C, Hh, Ww = image_input.shape
    ps = patch_size
    patches = image_input.reshape(B, C, Hh // ps, ps, Ww // ps, ps)
    patches = jnp.transpose(patches, (0, 2, 4, 1, 3, 5))                # (B,Hp,Wp,C,ps,ps)
    patches = patches.reshape(B, (Hh // ps) * (Ww // ps), C * ps * ps)  # (B, P, Dp)
    pooled = jnp.mean(patches.astype(jnp.float32), axis=1)              # (B, Dp)
    pooled = pooled.astype(jnp.bfloat16)

    # Fold stub patch-embed with the replaced head.fc:  (Dp,768) @ (768,768).
    w_img = jnp.dot(params["w_patch"], params["w_head"]).astype(jnp.bfloat16)

    head_params = {
        "w_pool": params["w_pool"].astype(jnp.bfloat16),   # (H, H) bf16
        "b_pool": params["b_pool"],                        # (1, H) f32
        "w_img": w_img,                                    # (Dp, H) bf16
        "b_head": params["b_head"],                        # (1, H) f32
        "w_fc_text": params["w_fc_text"].T,                # (1, H) f32 row
        "w_fc_img": params["w_fc_img"].T,                  # (1, H) f32 row
        "b_fc": params["b_fc"],                            # (1, 1) f32
    }
    return multisolver_head_pallas(masked_hidden, count, pooled, head_params)


def init_params(key, hidden=768, vocab=1000, patch_dim=48):
    ks = jax.random.split(key, 8)
    scale = 0.02
    text_embedding_size = hidden      # BERT-base pooler output size
    image_embedding_size = hidden     # replaced head.fc out_features = 768
    return {
        "word_emb": scale * jax.random.normal(ks[0], (vocab, hidden), jnp.float32),
        "type_emb": scale * jax.random.normal(ks[1], (2, hidden), jnp.float32),
        "w_patch": scale * jax.random.normal(ks[2], (patch_dim, hidden), jnp.float32),
        "w_pool": scale * jax.random.normal(ks[3], (hidden, hidden), jnp.float32),
        "b_pool": jnp.zeros((1, hidden), jnp.float32),
        "w_head": scale * jax.random.normal(ks[4], (hidden, hidden), jnp.float32),
        "b_head": jnp.zeros((1, hidden), jnp.float32),
        # fc: Linear(text_embedding_size + image_embedding_size, 1), rows split
        # into the text half and the image half (equivalent to concat).
        "w_fc_text": scale * jax.random.normal(ks[5], (text_embedding_size, 1), jnp.float32),
        "w_fc_img": scale * jax.random.normal(ks[6], (image_embedding_size, 1), jnp.float32),
        "b_fc": jnp.zeros((1, 1), jnp.float32),
    }


if __name__ == "__main__":
    key = jax.random.PRNGKey(0)
    k_param, k_ids, k_type, k_img = jax.random.split(key, 4)

    B, S = 2, 8                  # batch, sequence length
    C, H_IMG, W_IMG = 3, 16, 16  # image NCHW
    VOCAB = 1000

    params = init_params(k_param, hidden=768, vocab=VOCAB, patch_dim=C * 4 * 4)

    input_ids = jax.random.randint(k_ids, (B, S), 0, VOCAB, dtype=jnp.int32)
    attn_mask = jnp.array([[1, 1, 1, 1, 1, 1, 1, 1],
                           [1, 1, 1, 1, 1, 0, 0, 0]], dtype=jnp.int32)
    token_type_ids = jax.random.randint(k_type, (B, S), 0, 2, dtype=jnp.int32)
    image_input = jax.random.normal(k_img, (B, C, H_IMG, W_IMG), jnp.float32)

    out = multisolver_forward(params, input_ids, attn_mask, token_type_ids,
                              image_input)
    out = jax.block_until_ready(out)

    assert out.shape == (B, 1)
    assert bool(jnp.all(jnp.isfinite(out)))
    assert bool(jnp.all((out >= 0.0) & (out <= 1.0)))
    print("KERNEL_OK")
</pallas_src>

<mosaic_0001>
module attributes {stable_mosaic.version = 11 : i64} {
  func.func @multisolver_kernel(%arg0: i32, %arg1: i32, %arg2: memref<2x8x768xbf16, #tpu.memory_space<vmem>>, %arg3: memref<2x1xf32, #tpu.memory_space<vmem>>, %arg4: memref<2x48xbf16, #tpu.memory_space<vmem>>, %arg5: memref<768x768xbf16, #tpu.memory_space<vmem>>, %arg6: memref<1x768xf32, #tpu.memory_space<vmem>>, %arg7: memref<48x768xbf16, #tpu.memory_space<vmem>>, %arg8: memref<1x768xf32, #tpu.memory_space<vmem>>, %arg9: memref<1x768xf32, #tpu.memory_space<vmem>>, %arg10: memref<1x768xf32, #tpu.memory_space<vmem>>, %arg11: memref<1x1xf32, #tpu.memory_space<vmem>>, %arg12: memref<2x1xf32, #tpu.memory_space<vmem>>, %arg13: memref<2x768xf32, #tpu.memory_space<vmem>>) attributes {dimension_semantics = [#tpu.dimension_semantics<parallel>, #tpu.dimension_semantics<arbitrary>], iteration_bounds = array<i64: 1, 1>, scalar_prefetch = 0 : i64, scratch_operands = 1 : i64, tpu.core_type = #tpu.core_type<tc>, window_params = [{transform_indices = @transform_0, window_bounds = array<i64: 2, 8, 768>}, {transform_indices = @transform_1, window_bounds = array<i64: 2, 1>}, {transform_indices = @transform_2, window_bounds = array<i64: 2, 48>}, {pipeline_mode = #tpu.pipeline_mode<synchronous>, transform_indices = @transform_3, window_bounds = array<i64: 768, 768>}, {pipeline_mode = #tpu.pipeline_mode<synchronous>, transform_indices = @transform_4, window_bounds = array<i64: 1, 768>}, {pipeline_mode = #tpu.pipeline_mode<synchronous>, transform_indices = @transform_5, window_bounds = array<i64: 48, 768>}, {pipeline_mode = #tpu.pipeline_mode<synchronous>, transform_indices = @transform_6, window_bounds = array<i64: 1, 768>}, {pipeline_mode = #tpu.pipeline_mode<synchronous>, transform_indices = @transform_7, window_bounds = array<i64: 1, 768>}, {pipeline_mode = #tpu.pipeline_mode<synchronous>, transform_indices = @transform_8, window_bounds = array<i64: 1, 768>}, {pipeline_mode = #tpu.pipeline_mode<synchronous>, transform_indices = @transform_9, window_bounds = array<i64: 1, 1>}, {transform_indices = @transform_10, window_bounds = array<i64: 2, 1>}]} {
    %c0_i32 = arith.constant 0 : i32
    %0 = arith.cmpi eq, %arg1, %c0_i32 : i32
    %1 = arith.extui %0 : i1 to i32
    %c0_i32_0 = arith.constant 0 : i32
    %2 = arith.cmpi ne, %1, %c0_i32_0 : i32
    scf.if %2 {
      %cst_9 = arith.constant 0.000000e+00 : f32
      %12 = vector.broadcast %cst_9 : f32 to vector<2x768xf32>
      %c0_10 = arith.constant 0 : index
      %c0_11 = arith.constant 0 : index
      %13 = vector.load %arg13[%c0_10, %c0_11] : memref<2x768xf32, #tpu.memory_space<vmem>>, vector<2x768xf32>
      tpu.vector_store %arg13[%c0_10, %c0_11], %12 {strides = array<i32>} : memref<2x768xf32, #tpu.memory_space<vmem>>, vector<2x768xf32>,
    } else {
    }
    %c0 = arith.constant 0 : index
    %c0_1 = arith.constant 0 : index
    %3 = vector.load %arg13[%c0, %c0_1] : memref<2x768xf32, #tpu.memory_space<vmem>>, vector<2x768xf32>
    %c0_2 = arith.constant 0 : index
    %c0_3 = arith.constant 0 : index
    %c0_4 = arith.constant 0 : index
    %4 = vector.load %arg2[%c0_2, %c0_3, %c0_4] : memref<2x8x768xbf16, #tpu.memory_space<vmem>>, vector<2x8x768xbf16>
    %5 = arith.extf %4 : vector<2x8x768xbf16> to vector<2x8x768xf32>
    %cst = arith.constant dense<0.000000e+00> : vector<2x768xf32>
    %6 = vector.multi_reduction <add>, %5, %cst [1] : vector<2x8x768xf32> to vector<2x768xf32>
    %7 = arith.addf %3, %6 : vector<2x768xf32>
    %c0_5 = arith.constant 0 : index
    %c0_6 = arith.constant 0 : index
    %8 = vector.load %arg13[%c0_5, %c0_6] : memref<2x768xf32, #tpu.memory_space<vmem>>, vector<2x768xf32>
    tpu.vector_store %arg13[%c0_5, %c0_6], %7 {strides = array<i32>} : memref<2x768xf32, #tpu.memory_space<vmem>>, vector<2x768xf32>,
    %c0_i32_7 = arith.constant 0 : i32
    %9 = arith.cmpi eq, %arg1, %c0_i32_7 : i32
    %10 = arith.extui %9 : i1 to i32
    %c0_i32_8 = arith.constant 0 : i32
    %11 = arith.cmpi ne, %10, %c0_i32_8 : i32
    scf.if %11 {
      %c0_9 = arith.constant 0 : index
      %c0_10 = arith.constant 0 : index
      %12 = vector.load %arg3[%c0_9, %c0_10] : memref<2x1xf32, #tpu.memory_space<vmem>>, vector<2x1xf32>
      %13 = tpu.reciprocal %12 {approx = true} : vector<2x1xf32> -> vector<2x1xf32>
      %c0_11 = arith.constant 0 : index
      %c0_12 = arith.constant 0 : index
      %14 = vector.load %arg13[%c0_11, %c0_12] : memref<2x768xf32, #tpu.memory_space<vmem>>, vector<2x768xf32>
      %15 = vector.broadcast %13 : vector<2x1xf32> to vector<2x768xf32>
      %16 = arith.mulf %14, %15 : vector<2x768xf32>
      %17 = arith.truncf %16 : vector<2x768xf32> to vector<2x768xbf16>
      %c0_13 = arith.constant 0 : index
      %c0_14 = arith.constant 0 : index
      %18 = vector.load %arg5[%c0_13, %c0_14] : memref<768x768xbf16, #tpu.memory_space<vmem>>, vector<768x768xbf16>
      %cst_15 = arith.constant dense<0.000000e+00> : vector<2x768xf32>
      %19 = tpu.matmul %17, %18, %cst_15 {dimension_numbers = #tpu.dot_dimension_numbers<[1], [0], [0], [1], [0, 0, 1, 1], [], []>} : vector<2x768xbf16>, vector<768x768xbf16>, vector<2x768xf32> -> vector<2x768xf32>
      %c0_16 = arith.constant 0 : index
      %c0_17 = arith.constant 0 : index
      %20 = vector.load %arg6[%c0_16, %c0_17] : memref<1x768xf32, #tpu.memory_space<vmem>>, vector<1x768xf32>
      %21 = vector.broadcast %20 : vector<1x768xf32> to vector<2x768xf32>
      %22 = arith.addf %19, %21 : vector<2x768xf32>
      %23 = math.tanh %22 : vector<2x768xf32>
      %c0_18 = arith.constant 0 : index
      %c0_19 = arith.constant 0 : index
      %24 = vector.load %arg4[%c0_18, %c0_19] : memref<2x48xbf16, #tpu.memory_space<vmem>>, vector<2x48xbf16>
      %c0_20 = arith.constant 0 : index
      %c0_21 = arith.constant 0 : index
      %25 = vector.load %arg7[%c0_20, %c0_21] : memref<48x768xbf16, #tpu.memory_space<vmem>>, vector<48x768xbf16>
      %cst_22 = arith.constant dense<0.000000e+00> : vector<2x768xf32>
      %26 = tpu.matmul %24, %25, %cst_22 {dimension_numbers = #tpu.dot_dimension_numbers<[1], [0], [0], [1], [0, 0, 1, 1], [], []>} : vector<2x48xbf16>, vector<48x768xbf16>, vector<2x768xf32> -> vector<2x768xf32>
      %c0_23 = arith.constant 0 : index
      %c0_24 = arith.constant 0 : index
      %27 = vector.load %arg8[%c0_23, %c0_24] : memref<1x768xf32, #tpu.memory_space<vmem>>, vector<1x768xf32>
      %28 = vector.broadcast %27 : vector<1x768xf32> to vector<2x768xf32>
      %29 = arith.addf %26, %28 : vector<2x768xf32>
      %c0_25 = arith.constant 0 : index
      %c0_26 = arith.constant 0 : index
      %30 = vector.load %arg9[%c0_25, %c0_26] : memref<1x768xf32, #tpu.memory_space<vmem>>, vector<1x768xf32>
      %31 = vector.broadcast %30 : vector<1x768xf32> to vector<2x768xf32>
      %32 = arith.mulf %23, %31 : vector<2x768xf32>
      %cst_27 = arith.constant dense<0.000000e+00> : vector<2xf32>
      %33 = vector.multi_reduction <add>, %32, %cst_27 [1] : vector<2x768xf32> to vector<2xf32>
      %34 = vector.shape_cast %33 : vector<2xf32> to vector<2x1xf32>
      %c0_28 = arith.constant 0 : index
      %c0_29 = arith.constant 0 : index
      %35 = vector.load %arg10[%c0_28, %c0_29] : memref<1x768xf32, #tpu.memory_space<vmem>>, vector<1x768xf32>
      %36 = vector.broadcast %35 : vector<1x768xf32> to vector<2x768xf32>
      %37 = arith.mulf %29, %36 : vector<2x768xf32>
      %cst_30 = arith.constant dense<0.000000e+00> : vector<2xf32>
      %38 = vector.multi_reduction <add>, %37, %cst_30 [1] : vector<2x768xf32> to vector<2xf32>
      %39 = vector.shape_cast %38 : vector<2xf32> to vector<2x1xf32>
      %40 = arith.addf %34, %39 : vector<2x1xf32>
      %c0_31 = arith.constant 0 : index
      %c0_32 = arith.constant 0 : index
      %41 = vector.load %arg11[%c0_31, %c0_32] : memref<1x1xf32, #tpu.memory_space<vmem>>, vector<1x1xf32>
      %42 = vector.broadcast %41 : vector<1x1xf32> to vector<2x1xf32>
      %43 = arith.addf %40, %42 : vector<2x1xf32>
      %44 = arith.negf %43 : vector<2x1xf32>
      %45 = math.exp %44 : vector<2x1xf32>
      %cst_33 = arith.constant 1.000000e+00 : f32
      %46 = vector.broadcast %cst_33 : f32 to vector<2x1xf32>
      %47 = arith.addf %46, %45 : vector<2x1xf32>
      %48 = arith.divf %46, %47 : vector<2x1xf32>
      %c0_34 = arith.constant 0 : index
      %c0_35 = arith.constant 0 : index
      %49 = vector.load %arg12[%c0_34, %c0_35] : memref<2x1xf32, #tpu.memory_space<vmem>>, vector<2x1xf32>
      tpu.vector_store %arg12[%c0_34, %c0_35], %48 {strides = array<i32>} : memref<2x1xf32, #tpu.memory_space<vmem>>, vector<2x1xf32>,
    } else {
    }
    return
  }
  func.func @transform_0(%arg0: i32, %arg1: i32) -> (i32, i32, i32) {
    %c0_i32 = arith.constant 0 : i32
    %c0_i32_0 = arith.constant 0 : i32
    return %arg0, %arg1, %c0_i32 : i32, i32, i32
  }
  func.func @transform_1(%arg0: i32, %arg1: i32) -> (i32, i32) {
    %c0_i32 = arith.constant 0 : i32
    %c0_i32_0 = arith.constant 0 : i32
    return %arg0, %c0_i32 : i32, i32
  }
  func.func @transform_2(%arg0: i32, %arg1: i32) -> (i32, i32) {
    %c0_i32 = arith.constant 0 : i32
    %c0_i32_0 = arith.constant 0 : i32
    return %arg0, %c0_i32 : i32, i32
  }
  func.func @transform_3(%arg0: i32, %arg1: i32) -> (i32, i32) {
    %c0_i32 = arith.constant 0 : i32
    %c0_i32_0 = arith.constant 0 : i32
    %c0_i32_1 = arith.constant 0 : i32
    return %c0_i32, %c0_i32_0 : i32, i32
  }
  func.func @transform_4(%arg0: i32, %arg1: i32) -> (i32, i32) {
    %c0_i32 = arith.constant 0 : i32
    %c0_i32_0 = arith.constant 0 : i32
    %c0_i32_1 = arith.constant 0 : i32
    return %c0_i32, %c0_i32_0 : i32, i32
  }
  func.func @transform_5(%arg0: i32, %arg1: i32) -> (i32, i32) {
    %c0_i32 = arith.constant 0 : i32
    %c0_i32_0 = arith.constant 0 : i32
    %c0_i32_1 = arith.constant 0 : i32
    return %c0_i32, %c0_i32_0 : i32, i32
  }
  func.func @transform_6(%arg0: i32, %arg1: i32) -> (i32, i32) {
    %c0_i32 = arith.constant 0 : i32
    %c0_i32_0 = arith.constant 0 : i32
    %c0_i32_1 = arith.constant 0 : i32
    return %c0_i32, %c0_i32_0 : i32, i32
  }
  func.func @transform_7(%arg0: i32, %arg1: i32) -> (i32, i32) {
    %c0_i32 = arith.constant 0 : i32
    %c0_i32_0 = arith.constant 0 : i32
    %c0_i32_1 = arith.constant 0 : i32
    return %c0_i32, %c0_i32_0 : i32, i32
  }
  func.func @transform_8(%arg0: i32, %arg1: i32) -> (i32, i32) {
    %c0_i32 = arith.constant 0 : i32
    %c0_i32_0 = arith.constant 0 : i32
    %c0_i32_1 = arith.constant 0 : i32
    return %c0_i32, %c0_i32_0 : i32, i32
  }
  func.func @transform_9(%arg0: i32, %arg1: i32) -> (i32, i32) {
    %c0_i32 = arith.constant 0 : i32
    %c0_i32_0 = arith.constant 0 : i32
    %c0_i32_1 = arith.constant 0 : i32
    return %c0_i32, %c0_i32_0 : i32, i32
  }
  func.func @transform_10(%arg0: i32, %arg1: i32) -> (i32, i32) {
    %c0_i32 = arith.constant 0 : i32
    %c0_i32_0 = arith.constant 0 : i32
    return %arg0, %c0_i32 : i32, i32
  }
}

</mosaic_0001>

<bundles_post_ra>
// kernel: multisolver_forward.1
= control target key start
LH: loop header
LB: loop body
LE: loop exit
PB: predicated region body
PF: predicated region fallthrough
CT: control target
= control target key end

     0   :  { %v3632_v0 = vmov 0   ;;  %v3633_v2 = vmov 0.0   ;;  %vm203_vm0 = vcmask 1041409   ;;  %vm205_vm1 = vcmask 1043459   ;;  %s4738_s1 = inlined_call_operand.vmem [shape: f32[2,1], index: 1, kind: input, shape index: {}]   ;;  %s4739_s3 = inlined_call_operand.vmem [shape: bf16[768,768], index: 3, kind: input, shape index: {}]   ;;  %s4740_s0 = inlined_call_operand.vmem [shape: bf16[2,8,768], index: 0, kind: input, shape index: {}]   ;;  %s4741_s5 = inlined_call_operand.vmem [shape: bf16[48,768], index: 5, kind: input, shape index: {}]   ;;  %s4742_s2 = inlined_call_operand.vmem [shape: bf16[2,48], index: 2, kind: input, shape index: {}]   ;;  %s4743_s4 = inlined_call_operand.vmem [shape: f32[1,768], index: 4, kind: input, shape index: {}]   ;;  %s4744_s7 = inlined_call_operand.vmem [shape: f32[1,768], index: 7, kind: input, shape index: {}]   ;;  %s4745_s6 = inlined_call_operand.vmem [shape: f32[1,768], index: 6, kind: input, shape index: {}]   ;;  %s4746_s8 = inlined_call_operand.vmem [shape: f32[1,768], index: 8, kind: input, shape index: {}]   ;;  %s4747_s9 = inlined_call_operand.<no memory space> [shape: f32[1,1], index: 9, kind: input, shape index: {}]   ;;  %s4748_s10 = inlined_call_operand.vmem [shape: f32[2,1], index: 10, kind: output, shape index: {}]  }
   0x1   :  { %3154 = vset.pattern.permute.xlu0 %v3632_v0  ;;  %v227_v1 = vld [vmem:[%s4738_s1] sm:$0x3]  ;;  %43 = vst [vmem:[#allocation2 + $0x8] sm:$0xf] %v3633_v2  ;;  %v3155_v3 = vld [vmem:[%s4739_s3 + $0x4] ss:$24 sps:$4 sm:$0xff]  }
   0x2   :  { %3614 = vrcp.f32 %v227_v1  ;;  %v3157_v4 = vld [vmem:[%s4739_s3] ss:$24 sps:$4 sm:$0xff]   ;;  %v3158_v5 = vld [vmem:[%s4739_s3 + $0x304] ss:$24 sps:$4 sm:$0xff]   ;;  %2044 = vmatprep.subr.bf16.mxu1 %v3155_v3  ;;  %v3161_v7 = vld [vmem:[%s4739_s3 + $0x34] ss:$24 sps:$4 sm:$0xff]  }
   0x3   :  { %v3160_v6 = vld [vmem:[%s4739_s3 + $0x300] ss:$24 sps:$4 sm:$0xff]   ;;  %2045 = vmatpush1.bf16.msra.mxu1 %v3157_v4  ;;  %2085 = vmatprep.subr.bf16.mxu0 %v3158_v5  ;;  %v3163_v8 = vld [vmem:[%s4739_s3 + $0x30] ss:$24 sps:$4 sm:$0xff]   ;;  %v3164_v9 = vld [vmem:[%s4739_s3 + $0x334] ss:$24 sps:$4 sm:$0xff]  }
   0x4   :  { %2086 = vmatpush1.bf16.msra.mxu0 %v3160_v6  ;;  %2046 = vmatprep.subr.bf16.mxu1 %v3161_v7  ;;  %v3166_v10 = vld [vmem:[%s4739_s3 + $0x330] ss:$24 sps:$4 sm:$0xff]   ;;  %v3167_v11 = vld [vmem:[%s4739_s3 + $0x64] ss:$24 sps:$4 sm:$0xff]   ;;  %v3169_v13 = vld [vmem:[%s4739_s3 + $0x60] ss:$24 sps:$4 sm:$0xff]  }
   0x5   :  { %2087 = vmatprep.subr.bf16.mxu0 %v3164_v9  ;;  %v3170_v12 = vld [vmem:[%s4739_s3 + $0x364] ss:$24 sps:$4 sm:$0xff]   ;;  %v3172_v14 = vld [vmem:[%s4739_s3 + $0x360] ss:$24 sps:$4 sm:$0xff]   ;;  %v3173_v15 = vld [vmem:[%s4739_s3 + $0x94] ss:$24 sps:$4 sm:$0xff]  }
   0x6   :  { %v3176_v16 = vld [vmem:[%s4739_s3 + $0x394] ss:$24 sps:$4 sm:$0xff]   ;;  %v3175_v18 = vld [vmem:[%s4739_s3 + $0x90] ss:$24 sps:$4 sm:$0xff]   ;;  %v3179_v20 = vld [vmem:[%s4739_s3 + $0xc4] ss:$24 sps:$4 sm:$0xff]  }
   0x7   :  { %2047 = vmatpush1.bf16.msra.mxu1 %v3163_v8  ;;  %v3178_v19 = vld [vmem:[%s4739_s3 + $0x390] ss:$24 sps:$4 sm:$0xff]   ;;  %v3182_v21 = vld [vmem:[%s4739_s3 + $0x3c4] ss:$24 sps:$4 sm:$0xff]   ;;  %v3181_v22 = vld [vmem:[%s4739_s3 + $0xc0] ss:$24 sps:$4 sm:$0xff]  }
   0x8   :  { %2088 = vmatpush1.bf16.msra.mxu0 %v3166_v10  ;;  %2048 = vmatprep.subr.bf16.mxu1 %v3167_v11  ;;  %v3184_v23 = vld [vmem:[%s4739_s3 + $0x3c0] ss:$24 sps:$4 sm:$0xff]   ;;  %v3185_v24 = vld [vmem:[%s4739_s3 + $0xf4] ss:$24 sps:$4 sm:$0xff]   ;;  %v3187_v26 = vld [vmem:[%s4739_s3 + $0xf0] ss:$24 sps:$4 sm:$0xff]  }
   0x9   :  { %2089 = vmatprep.subr.bf16.mxu0 %v3170_v12  ;;  %v3188_v25 = vld [vmem:[%s4739_s3 + $0x3f4] ss:$24 sps:$4 sm:$0xff]   ;;  %v3190_v27 = vld [vmem:[%s4739_s3 + $0x3f0] ss:$24 sps:$4 sm:$0xff]   ;;  %v3191_v28 = vld [vmem:[%s4739_s3 + $0x124] ss:$24 sps:$4 sm:$0xff]  }
   0xa   :  { %v3194_v29 = vld [vmem:[%s4739_s3 + $0x424] ss:$24 sps:$4 sm:$0xff]   ;;  %v3193_v30 = vld [vmem:[%s4739_s3 + $0x120] ss:$24 sps:$4 sm:$0xff]   ;;  %v3197_v32 = vld [vmem:[%s4739_s3 + $0x154] ss:$24 sps:$4 sm:$0xff]  }
   0xb   :  { %2049 = vmatpush1.bf16.msra.mxu1 %v3169_v13  ;;  %v3196_v31 = vld [vmem:[%s4739_s3 + $0x420] ss:$24 sps:$4 sm:$0xff]   ;;  %v3200_v33 = vld [vmem:[%s4739_s3 + $0x454] ss:$24 sps:$4 sm:$0xff]   ;;  %v3199_v34 = vld [vmem:[%s4739_s3 + $0x150] ss:$24 sps:$4 sm:$0xff]  }
   0xc   :  { %v3615_v17 = vpop.eup %3614  ;;  %2090 = vmatpush1.bf16.msra.mxu0 %v3172_v14  ;;  %2050 = vmatprep.subr.bf16.mxu1 %v3173_v15  ;;  %v3202_v35 = vld [vmem:[%s4739_s3 + $0x450] ss:$24 sps:$4 sm:$0xff]   ;;  %v3203_v36 = vld [vmem:[%s4739_s3 + $0x184] ss:$24 sps:$4 sm:$0xff]   ;;  %v3205_v38 = vld [vmem:[%s4739_s3 + $0x180] ss:$24 sps:$4 sm:$0xff]  }
   0xd   :  { %233 = vperm.xlu0 %3154, %v3615_v17   ;;  %2091 = vmatprep.subr.bf16.mxu0 %v3176_v16  ;;  %v3206_v37 = vld [vmem:[%s4739_s3 + $0x484] ss:$24 sps:$4 sm:$0xff]   ;;  %v3208_v39 = vld [vmem:[%s4739_s3 + $0x480] ss:$24 sps:$4 sm:$0xff]   ;;  %v3209_v40 = vld [vmem:[%s4739_s3 + $0x1b4] ss:$24 sps:$4 sm:$0xff]  }
   0xe   :  { %v3212_v41 = vld [vmem:[%s4739_s3 + $0x4b4] ss:$24 sps:$4 sm:$0xff]   ;;  %v3211_v42 = vld [vmem:[%s4739_s3 + $0x1b0] ss:$24 sps:$4 sm:$0xff]   ;;  %v3215_v44 = vld [vmem:[%s4739_s3 + $0x1e4] ss:$24 sps:$4 sm:$0xff]  }
   0xf   :  { %2051 = vmatpush1.bf16.msra.mxu1 %v3175_v18  ;;  %v3214_v43 = vld [vmem:[%s4739_s3 + $0x4b0] ss:$24 sps:$4 sm:$0xff]   ;;  %v46_v45 = vld [vmem:[%s4740_s0] sm:$0xff]  ;;  %v49_v48 = vld [vmem:[%s4740_s0 + $0x18] sm:$0xff]  ;;  %vm207_vm2 = vcmask 1045509   ;;  %vm209_vm3 = vcmask 1047559  }
  0x10   :  { %2092 = vmatpush1.bf16.msra.mxu0 %v3178_v19  ;;  %2052 = vmatprep.subr.bf16.mxu1 %v3179_v20  ;;  %v47_v46 = vld [vmem:[%s4740_s0 + $0x8] sm:$0xff]  ;;  %v48_v47 = vld [vmem:[%s4740_s0 + $0x10] sm:$0xff]  ;;  %v52_v49 = vunpack.c.l.bf16 %v46_v45  ;;  %v53_v50 = vunpack.c.h.bf16 %v46_v45  ;;  %v3218_v51 = vld [vmem:[%s4739_s3 + $0x4e4] ss:$24 sps:$4 sm:$0xff]   ;;  %v58_v57 = vunpack.c.l.bf16 %v49_v48  ;;  %v59_v58 = vunpack.c.h.bf16 %v49_v48 }
  0x11   :  { %2093 = vmatprep.subr.bf16.mxu0 %v3182_v21  ;;  %v54_v52 = vunpack.c.l.bf16 %v47_v46  ;;  %v55_v53 = vunpack.c.h.bf16 %v47_v46  ;;  %v56_v54 = vunpack.c.l.bf16 %v48_v47  ;;  %v57_v55 = vunpack.c.h.bf16 %v48_v47  ;;  %v3217_v56 = vld [vmem:[%s4739_s3 + $0x1e0] ss:$24 sps:$4 sm:$0xff]   ;;  %v3221_v62 = vld [vmem:[%s4739_s3 + $0x214] ss:$24 sps:$4 sm:$0xff]   ;;  %v3223_v4 = vld [vmem:[%s4739_s3 + $0x210] ss:$24 sps:$4 sm:$0xff]  }
  0x12   :  { %v3220_v59 = vld [vmem:[%s4739_s3 + $0x4e0] ss:$24 sps:$4 sm:$0xff]   ;;  %v64_v60 = vrot.slane %v52_v49, 4  ;;  %v70_v61 = vrot.slane %v53_v50, 4  ;;  %v3224_v5 = vld [vmem:[%s4739_s3 + $0x514] ss:$24 sps:$4 sm:$0xff]  }
  0x13   :  { %2053 = vmatpush1.bf16.msra.mxu1 %v3181_v22  ;;  %v76_v63 = vrot.slane %v54_v52, 4  ;;  %v82_v1 = vrot.slane %v55_v53, 4  ;;  %v88_v2 = vrot.slane %v56_v54, 4  ;;  %v94_v3 = vrot.slane %v57_v55, 4  ;;  %v3226_v10 = vld [vmem:[%s4739_s3 + $0x510] ss:$24 sps:$4 sm:$0xff]  }
  0x14   :  { %2094 = vmatpush1.bf16.msra.mxu0 %v3184_v23  ;;  %2054 = vmatprep.subr.bf16.mxu1 %v3185_v24  ;;  %v65_v6 = vadd.f32 %v64_v60, %v52_v49  ;;  %v71_v7 = vadd.f32 %v70_v61, %v53_v50  ;;  %v100_v8 = vrot.slane %v58_v57, 4  ;;  %v106_v9 = vrot.slane %v59_v58, 4  ;;  %v3227_v15 = vld [vmem:[%s4739_s3 + $0x244] ss:$24 sps:$4 sm:$0xff]   ;;  %v3235_v45 = vld [vmem:[%s4739_s3 + $0x270] ss:$24 sps:$4 sm:$0xff]  }
  0x15   :  { %2095 = vmatprep.subr.bf16.mxu0 %v3188_v25  ;;  %v77_v11 = vadd.f32 %v76_v63, %v54_v52  ;;  %v83_v12 = vadd.f32 %v82_v1, %v55_v53  ;;  %v89_v13 = vadd.f32 %v88_v2, %v56_v54  ;;  %v95_v14 = vadd.f32 %v94_v3, %v57_v55  ;;  %v50_v16 = vld [vmem:[%s4740_s0 + $0x20] sm:$0xff]  ;;  %v3236_v48 = vld [vmem:[%s4739_s3 + $0x574] ss:$24 sps:$4 sm:$0xff]   ;;  %v3238_v54 = vld [vmem:[%s4739_s3 + $0x570] ss:$24 sps:$4 sm:$0xff]  }
  0x16   :  { %v66_v17 = vrot.slane %v65_v6, 2  ;;  %v72_v18 = vrot.slane %v71_v7, 2  ;;  %v101_v19 = vadd.f32 %v100_v8, %v58_v57  ;;  %v107_v20 = vadd.f32 %v106_v9, %v59_v58  ;;  %v3230_v25 = vld [vmem:[%s4739_s3 + $0x544] ss:$24 sps:$4 sm:$0xff]  }
  0x17   :  { %2055 = vmatpush1.bf16.msra.mxu1 %v3187_v26  ;;  %v78_v21 = vrot.slane %v77_v11, 2  ;;  %v84_v22 = vrot.slane %v83_v12, 2  ;;  %v90_v23 = vrot.slane %v89_v13, 2  ;;  %v96_v24 = vrot.slane %v95_v14, 2  ;;  %v51_v26 = vld [vmem:[%s4740_s0 + $0x28] sm:$0xff] }
  0x18   :  { %2096 = vmatpush1.bf16.msra.mxu0 %v3190_v27  ;;  %2056 = vmatprep.subr.bf16.mxu1 %v3191_v28  ;;  %v67_v27 = vadd.f32 %v66_v17, %v65_v6  ;;  %v73_v28 = vadd.f32 %v72_v18, %v71_v7  ;;  %v3634_v49 = vmov 1983009808   ;;  %v3239_v55 = vld [vmem:[%s4739_s3 + $0x2a4] ss:$24 sps:$4 sm:$0xff]   ;;  %v3245_v18 = vld [vmem:[%s4739_s3 + $0x2d4] ss:$24 sps:$4 sm:$0xff]  }
  0x19   :  { %2097 = vmatprep.subr.bf16.mxu0 %v3194_v29  ;;  %v102_v29 = vrot.slane %v101_v19, 2  ;;  %v151_v50 = vunpack.c.l.s4 %v3634_v49  ;;  %vm2560_vm4 = vcmask 392192   ;;  %vm2725_vm5 = vcmask 1041408  }
  0x1a   :  { %v68_v46 = vrot.slane %v67_v27, 1  ;;  %v74_v47 = vrot.slane %v73_v28, 1  ;;  %vm2805_vm6 = vcmask 1024  }
  0x1b   :  { %2057 = vmatpush1.bf16.msra.mxu1 %v3193_v30  ;;  %v108_v30 = vrot.slane %v107_v20, 2 }
  0x1c   :  { %2098 = vmatpush1.bf16.msra.mxu0 %v3196_v31  ;;  %2058 = vmatprep.subr.bf16.mxu1 %v3197_v32  ;;  %v153_v31 = vlaneseq  ;;  %v79_v32 = vadd.f32 %v78_v21, %v77_v11  ;;  %v69_v1 = vadd.f32 %v68_v46, %v67_v27  ;;  %v75_v2 = vadd.f32 %v74_v47, %v73_v28  ;;  %v3247_v28 = vld [vmem:[%s4739_s3 + $0x2d0] ss:$24 sps:$4 sm:$0xff]  }
  0x1d   :  { %2099 = vmatprep.subr.bf16.mxu0 %v3200_v33  ;;  %v85_v33 = vadd.f32 %v84_v22, %v83_v12 }
  0x1e   :  { %v80_v52 = vrot.slane %v79_v32, 1  ;;  %v148_v27 = vcombine.low %v69_v1, %v75_v2 }
  0x1f   :  { %2059 = vmatpush1.bf16.msra.mxu1 %v3199_v34  ;;  %v3229_v34 = vld [vmem:[%s4739_s3 + $0x240] ss:$24 sps:$4 sm:$0xff]   ;;  %v86_v53 = vrot.slane %v85_v33, 1 }
  0x20   :  { %2100 = vmatpush1.bf16.msra.mxu0 %v3202_v35  ;;  %2060 = vmatprep.subr.bf16.mxu1 %v3203_v36  ;;  %v60_v35 = vunpack.c.l.bf16 %v50_v16  ;;  %v61_v36 = vunpack.c.h.bf16 %v50_v16  ;;  %v81_v6 = vadd.f32 %v80_v52, %v79_v32 }
  0x21   :  { %2101 = vmatprep.subr.bf16.mxu0 %v3206_v37  ;;  %v103_v37 = vadd.f32 %v102_v29, %v101_v19  ;;  %v87_v7 = vadd.f32 %v86_v53, %v85_v33  ;;  %v152_v19 = vunpack.c.0.s8 %v151_v50  ;;  %v3250_v33 = vld [vmem:[%s4739_s3 + $0x5d0] ss:$24 sps:$4 sm:$0xff]  }
  0x22   :  { %v112_v58 = vrot.slane %v60_v35, 4 }
  0x23   :  { %2061 = vmatpush1.bf16.msra.mxu1 %v3205_v38  ;;  %v109_v38 = vadd.f32 %v108_v30, %v107_v20 }
  0x24   :  { %2102 = vmatpush1.bf16.msra.mxu0 %v3208_v39  ;;  %2062 = vmatprep.subr.bf16.mxu1 %v3209_v40  ;;  %v3232_v39 = vld [vmem:[%s4739_s3 + $0x540] ss:$24 sps:$4 sm:$0xff]   ;;  %v3233_v40 = vld [vmem:[%s4739_s3 + $0x274] ss:$24 sps:$4 sm:$0xff]   ;;  %v113_v3 = vadd.f32 %v112_v58, %v60_v35  ;;  %v45_v58 = vld [vmem:[#allocation2 + $0x8] sm:$0xf] }
  0x25   :  { %2103 = vmatprep.subr.bf16.mxu0 %v3212_v41  ;;  %v62_v41 = vunpack.c.l.bf16 %v51_v26  ;;  %v110_v57 = vrot.slane %v109_v38, 1 }
  0x27   :  { %2063 = vmatpush1.bf16.msra.mxu1 %v3211_v42  ;;  %v63_v42 = vunpack.c.h.bf16 %v51_v26  ;;  %v111_v12 = vadd.f32 %v110_v57, %v109_v38 }
  0x28   :  { %2104 = vmatpush1.bf16.msra.mxu0 %v3214_v43  ;;  %2064 = vmatprep.subr.bf16.mxu1 %v3215_v44  ;;  %v91_v43 = vadd.f32 %v90_v23, %v89_v13  ;;  %v97_v44 = vadd.f32 %v96_v24, %v95_v14  ;;  %v114_v13 = vrot.slane %v113_v3, 2  ;;  %v3248_v23 = vld [vmem:[%s4739_s3 + $0x5d4] ss:$24 sps:$4 sm:$0xff]  }
  0x29   :  { %2105 = vmatprep.subr.bf16.mxu0 %v3218_v51  ;;  %v3878_v51 = vshrl.u32 %v153_v31, 7  ;;  %v130_v63 = vrot.slane %v63_v42, 4  ;;  %v149_v31 = vcombine.low %v81_v6, %v87_v7 }
  0x2a   :  { %v92_v60 = vrot.slane %v91_v43, 1  ;;  %v98_v61 = vrot.slane %v97_v44, 1  ;;  %v115_v21 = vadd.f32 %v114_v13, %v113_v3 }
  0x2b   :  { %2065 = vmatpush1.bf16.msra.mxu1 %v3217_v56  ;;  %v104_v56 = vrot.slane %v103_v37, 1  ;;  %v131_v9 = vadd.f32 %v130_v63, %v63_v42 }
  0x2c   :  { %2106 = vmatpush1.bf16.msra.mxu0 %v3220_v59  ;;  %2066 = vmatprep.subr.bf16.mxu1 %v3221_v62  ;;  %v118_v59 = vrot.slane %v61_v36, 4  ;;  %v124_v62 = vrot.slane %v62_v41, 4  ;;  %v93_v20 = vadd.f32 %v92_v60, %v91_v43  ;;  %v99_v24 = vadd.f32 %v98_v61, %v97_v44 }
  0x2d   :  { %2107 = vmatprep.subr.bf16.mxu0 %v3224_v5  ;;  %v3242_v5 = vld [vmem:[%s4739_s3 + $0x5a4] ss:$24 sps:$4 sm:$0xff]   ;;  %v105_v11 = vadd.f32 %v104_v56, %v103_v37  ;;  %v132_v17 = vrot.slane %v131_v9, 2  ;;  %v116_v29 = vrot.slane %v115_v21, 1  ;;  %v155_v37 = vsub.s32 %v152_v19, %v3878_v51  ;;  %v3251_v19 = vld [vmem:[%s4739_s3 + $0x8] ss:$24 sps:$4 sm:$0xff]  }
  0x2e   :  { %v125_v8 = vadd.f32 %v124_v62, %v62_v41  ;;  %v165_v43 = vcombine.low %v93_v20, %v99_v24 }
  0x2f   :  { %2067 = vmatpush1.bf16.msra.mxu1 %v3223_v4  ;;  %v119_v4 = vadd.f32 %v118_v59, %v61_v36  ;;  %v133_v26 = vadd.f32 %v132_v17, %v131_v9  ;;  %v173_v32 = vcombine.low %v105_v11, %v111_v12  ;;  %v3253_v36 = vld [vmem:[%s4739_s3 + $0xc] ss:$24 sps:$4 sm:$0xff]   ;;  %v117_v38 = vadd.f32 %v116_v29, %v115_v21  ;;  %v3257_v29 = vld [vmem:[%s4739_s3 + $0x38] ss:$24 sps:$4 sm:$0xff]  }
  0x30   :  { %2108 = vmatpush1.bf16.msra.mxu0 %v3226_v10  ;;  %2068 = vmatprep.subr.bf16.mxu1 %v3227_v15  ;;  %v3241_v10 = vld [vmem:[%s4739_s3 + $0x2a0] ss:$24 sps:$4 sm:$0xff]   ;;  %v126_v16 = vrot.slane %v125_v8, 2  ;;  %v156_v44 = vrot.slane %v148_v27, %v155_v37  ;;  %v172_v50 = vrot.slane %v165_v43, %v155_v37  ;;  %v3262_v27 = vld [vmem:[%s4739_s3 + $0x634] ss:$24 sps:$4 sm:$0xff]  }
  0x31   :  { %2109 = vmatprep.subr.bf16.mxu0 %v3230_v25  ;;  %v120_v14 = vrot.slane %v119_v4, 2  ;;  %v3244_v15 = vld [vmem:[%s4739_s3 + $0x5a0] ss:$24 sps:$4 sm:$0xff]   ;;  %v134_v35 = vrot.slane %v133_v26, 1  ;;  %v181_v47 = vrot.slane %v173_v32, %v155_v37  ;;  %v3268_v32 = vld [vmem:[%s4739_s3 + $0x664] ss:$24 sps:$4 sm:$0xff]  }
  0x32   :  { %v127_v25 = vadd.f32 %v126_v16, %v125_v8  ;;  %v3278_v43 = vld [vmem:[%s4739_s3 + $0x6c0] ss:$24 sps:$4 sm:$0xff]  }
  0x33   :  { %2069 = vmatpush1.bf16.msra.mxu1 %v3229_v34  ;;  %v121_v22 = vadd.f32 %v120_v14, %v119_v4  ;;  %v135_v42 = vadd.f32 %v134_v35, %v133_v26  ;;  %v3635_v4 = vmov 269488144   ;;  %v3266_v35 = vld [vmem:[%s4739_s3 + $0x660] ss:$24 sps:$4 sm:$0xff]  }
  0x34   :  { %2110 = vmatpush1.bf16.msra.mxu0 %v3232_v39  ;;  %2070 = vmatprep.subr.bf16.mxu1 %v3233_v40  ;;  %v128_v34 = vrot.slane %v127_v25, 1  ;;  %v3256_v40 = vld [vmem:[%s4739_s3 + $0x604] ss:$24 sps:$4 sm:$0xff]  }
  0x35   :  { %2111 = vmatprep.subr.bf16.mxu0 %v3236_v48  ;;  %v122_v30 = vrot.slane %v121_v22, 1 }
  0x36   :  { %v129_v41 = vadd.f32 %v128_v34, %v127_v25  ;;  %v3259_v25 = vld [vmem:[%s4739_s3 + $0x3c] ss:$24 sps:$4 sm:$0xff]  }
  0x37   :  { %2071 = vmatpush1.bf16.msra.mxu1 %v3235_v45  ;;  %v123_v39 = vadd.f32 %v122_v30, %v121_v22  ;;  %v163_v45 = vrot.slane %v149_v31, %v155_v37  ;;  %v3265_v30 = vld [vmem:[%s4739_s3 + $0x6c] ss:$24 sps:$4 sm:$0xff]   ;;  %v3260_v31 = vld [vmem:[%s4739_s3 + $0x630] ss:$24 sps:$4 sm:$0xff]   ;;  %v3271_v34 = vld [vmem:[%s4739_s3 + $0x9c] ss:$24 sps:$4 sm:$0xff]  }
  0x38   :  { %2112 = vmatpush1.bf16.msra.mxu0 %v3238_v54  ;;  %2072 = vmatprep.subr.bf16.mxu1 %v3239_v55  ;;  %v190_v48 = vcombine.low %v129_v41, %v135_v42  ;;  %v3275_v41 = vld [vmem:[%s4739_s3 + $0xc8] ss:$24 sps:$4 sm:$0xff]   ;;  %v3283_v42 = vld [vmem:[%s4739_s3 + $0xfc] ss:$24 sps:$4 sm:$0xff]  }
  0x39   :  { %2113 = vmatprep.subr.bf16.mxu0 %v3242_v5  ;;  %v174_v46 = vcombine.low %v117_v38, %v123_v39  ;;  %v164_v53 = vcombine.low %v156_v44, %v163_v45  ;;  %v236_v5 = vunpack.c.l.s4 %v3635_v4  ;;  %v3277_v38 = vld [vmem:[%s4739_s3 + $0xcc] ss:$24 sps:$4 sm:$0xff]   ;;  %v3272_v39 = vld [vmem:[%s4739_s3 + $0x690] ss:$24 sps:$4 sm:$0xff]   ;;  %v3319_v4 = vld [vmem:[%s4739_s3 + $0x21c] ss:$24 sps:$4 sm:$0xff]  }
  0x3a   :  { %v197_v52 = vrot.slane %v190_v48, %v155_v37  ;;  %v3286_v44 = vld [vmem:[%s4739_s3 + $0x6f4] ss:$24 sps:$4 sm:$0xff]   ;;  %v3281_v45 = vld [vmem:[%s4739_s3 + $0xf8] ss:$24 sps:$4 sm:$0xff]   ;;  %v3292_v48 = vld [vmem:[%s4739_s3 + $0x724] ss:$24 sps:$4 sm:$0xff]  }
  0x3b   :  { %2073 = vmatpush1.bf16.msra.mxu1 %v3241_v10  ;;  %v188_v49 = vrot.slane %v174_v46, %v155_v37  ;;  %v237_v6 = vunpack.c.0.s8 %v236_v5  ;;  %v3289_v46 = vld [vmem:[%s4739_s3 + $0x12c] ss:$24 sps:$4 sm:$0xff]   ;;  %v3314_v5 = vld [vmem:[%s4739_s3 + $0x7e0] ss:$24 sps:$4 sm:$0xff]  }
  0x3c   :  { %2114 = vmatpush1.bf16.msra.mxu0 %v3244_v15  ;;  %2074 = vmatprep.subr.bf16.mxu1 %v3245_v18  ;;  %v213_v55 = vrot.slane %v197_v52, 7  ;;  %v3290_v52 = vld [vmem:[%s4739_s3 + $0x720] ss:$24 sps:$4 sm:$0xff]  }
  0x3d   :  { %2115 = vmatprep.subr.bf16.mxu0 %v3248_v23  ;;  %v189_v54 = vcombine.low %v181_v47, %v188_v49  ;;  %v240_v7 = vsub.s32 %v237_v6, %v3878_v51  ;;  %v3254_v23 = vld [vmem:[%s4739_s3 + $0x600] ss:$24 sps:$4 sm:$0xff]   ;;  %v3284_v47 = vld [vmem:[%s4739_s3 + $0x6f0] ss:$24 sps:$4 sm:$0xff]   ;;  %v3322_v6 = vld [vmem:[%s4739_s3 + $0x814] ss:$24 sps:$4 sm:$0xff]  }
  0x3e   :  { %v214_v57 = vsel %vm203_vm0, %v213_v55, %v172_v50  ;;  %v3287_v49 = vld [vmem:[%s4739_s3 + $0x128] ss:$24 sps:$4 sm:$0xff]   ;;  %v3295_v50 = vld [vmem:[%s4739_s3 + $0x15c] ss:$24 sps:$4 sm:$0xff]  }
  0x3f   :  { %2075 = vmatpush1.bf16.msra.mxu1 %v3247_v28  ;;  %v202_v56 = vrot.slane %v189_v54, 7  ;;  %v215_v60 = vsel %vm205_vm1, %v213_v55, %v214_v57  ;;  %v3293_v54 = vld [vmem:[%s4739_s3 + $0x158] ss:$24 sps:$4 sm:$0xff]   ;;  %v3304_v57 = vld [vmem:[%s4739_s3 + $0x784] ss:$24 sps:$4 sm:$0xff]  }
  0x40   :  { %2116 = vmatpush1.bf16.msra.mxu0 %v3250_v33  ;;  %2167 = vmatprep.subr.bf16.mxu1 %v3253_v36  ;;  %v216_v62 = vsel %vm207_vm2, %v213_v55, %v215_v60  ;;  %v3263_v33 = vld [vmem:[%s4739_s3 + $0x68] ss:$24 sps:$4 sm:$0xff]   ;;  %v3274_v36 = vld [vmem:[%s4739_s3 + $0x694] ss:$24 sps:$4 sm:$0xff]  }
  0x41   :  { %2126 = vmatprep.subr.bf16.mxu0 %v3256_v40  ;;  %v204_v59 = vsel %vm203_vm0, %v202_v56, %v164_v53  ;;  %v217_v1 = vsel %vm209_vm3, %v213_v55, %v216_v62  ;;  %v3280_v40 = vld [vmem:[%s4739_s3 + $0x6c4] ss:$24 sps:$4 sm:$0xff]   ;;  %v3298_v53 = vld [vmem:[%s4739_s3 + $0x754] ss:$24 sps:$4 sm:$0xff]   ;;  %v3302_v60 = vld [vmem:[%s4739_s3 + $0x780] ss:$24 sps:$4 sm:$0xff]  }
  0x42   :  { %v206_v61 = vsel %vm205_vm1, %v202_v56, %v204_v59  ;;  %v221_v3 = vadd.f32 %v217_v1, %v45_v58  ;;  %v3301_v55 = vld [vmem:[%s4739_s3 + $0x18c] ss:$24 sps:$4 sm:$0xff]   ;;  %v3299_v58 = vld [vmem:[%s4739_s3 + $0x188] ss:$24 sps:$4 sm:$0xff]   ;;  %v3307_v59 = vld [vmem:[%s4739_s3 + $0x1bc] ss:$24 sps:$4 sm:$0xff]  }
  0x43   :  { %v208_v63 = vsel %vm207_vm2, %v202_v56, %v206_v61  ;;  %v3310_v61 = vld [vmem:[%s4739_s3 + $0x7b4] ss:$24 sps:$4 sm:$0xff]   ;;  %v3305_v62 = vld [vmem:[%s4739_s3 + $0x1b8] ss:$24 sps:$4 sm:$0xff]  }
  0x44   :  { %v210_v2 = vsel %vm209_vm3, %v202_v56, %v208_v63  ;;  %223 = vst [vmem:[#allocation2 + $0x8] sm:$0xf] %v221_v3  ;;  %v3296_v56 = vld [vmem:[%s4739_s3 + $0x750] ss:$24 sps:$4 sm:$0xff]   ;;  %v3313_v63 = vld [vmem:[%s4739_s3 + $0x1ec] ss:$24 sps:$4 sm:$0xff]  }
  0x45   :  { %v3308_v1 = vld [vmem:[%s4739_s3 + $0x7b0] ss:$24 sps:$4 sm:$0xff]  }
  0x46   :  { %v3311_v3 = vld [vmem:[%s4739_s3 + $0x1e8] ss:$24 sps:$4 sm:$0xff]  }
  0x4b   :  { %v230_v9 = vld [vmem:[#allocation2 + $0x8] sm:$0xf] }
  0x8c   :  { %v234_v8 = vpop.permute.xlu0 %233 }
  0x8d   :  { %v241_v10 = vrot.slane %v234_v8, %v240_v7  ;;  %v3317_v7 = vld [vmem:[%s4739_s3 + $0x218] ss:$24 sps:$4 sm:$0xff]   ;;  %v3325_v8 = vld [vmem:[%s4739_s3 + $0x24c] ss:$24 sps:$4 sm:$0xff]  }
  0x8f   :  { %v243_v11 = vmul.f32 %v241_v10, %v210_v2  ;;  %v244_v12 = vmul.f32 %v241_v10, %v230_v9  ;;  %v3316_v2 = vld [vmem:[%s4739_s3 + $0x7e4] ss:$24 sps:$4 sm:$0xff]   ;;  %v3320_v9 = vld [vmem:[%s4739_s3 + $0x810] ss:$24 sps:$4 sm:$0xff]  }
  0x90   :  { %v3328_v10 = vld [vmem:[%s4739_s3 + $0x844] ss:$24 sps:$4 sm:$0xff]  }
  0x91   :  { %v247_v13 = vcombine.high %v243_v11, %v243_v11  ;;  %v254_v14 = vrot.slane %v243_v11, %v155_v37  ;;  %v3915_v15 = vrot.slane %v244_v12, %v155_v37  ;;  %v3323_v11 = vld [vmem:[%s4739_s3 + $0x248] ss:$24 sps:$4 sm:$0xff]   ;;  %v3331_v12 = vld [vmem:[%s4739_s3 + $0x27c] ss:$24 sps:$4 sm:$0xff]  }
  0x93   :  { %v262_v16 = vcombine.high %v254_v14, %v254_v14  ;;  %v261_v17 = vrot.slane %v247_v13, %v155_v37  ;;  %v271_v21 = vcombine.high %v3915_v15, %v3915_v15  ;;  %v3924_v22 = vpack.c.bf16 %v254_v14, %v254_v14  ;;  %v3269_v37 = vld [vmem:[%s4739_s3 + $0x98] ss:$24 sps:$4 sm:$0xff]   ;;  %v3334_v14 = vld [vmem:[%s4739_s3 + $0x874] ss:$24 sps:$4 sm:$0xff]  }
  0x94   :  { %v3326_v13 = vld [vmem:[%s4739_s3 + $0x840] ss:$24 sps:$4 sm:$0xff]  }
  0x95   :  { %v3917_v18 = vpack.c.bf16 %v262_v16, %v262_v16  ;;  %v263_v20 = vcombine.high %v261_v17, %v261_v17  ;;  %v3936_v26 = vpack.c.bf16 %v261_v17, %v261_v17  ;;  %v3942_v28 = vpack.c.bf16 %v271_v21, %v271_v21  ;;  %v3329_v16 = vld [vmem:[%s4739_s3 + $0x278] ss:$24 sps:$4 sm:$0xff]   ;;  %v3337_v17 = vld [vmem:[%s4739_s3 + $0x2ac] ss:$24 sps:$4 sm:$0xff]   ;;  %v3335_v21 = vld [vmem:[%s4739_s3 + $0x2a8] ss:$24 sps:$4 sm:$0xff]  }
  0x97   :  { %2076 = vmatprep.mubr.bf16.mxu1 %v3917_v18  ;;  %v3930_v24 = vpack.c.bf16 %v263_v20, %v263_v20  ;;  %v3340_v20 = vld [vmem:[%s4739_s3 + $0x8a4] ss:$24 sps:$4 sm:$0xff]  }
  0x98   :  { %2077 = vmatmul.mubr.bf16.vlgmr.msra.gmra.mrb[0].mxu1 %v3924_v22 }
  0x99   :  { %2168 = vmatpush1.bf16.msra.mxu1 %v3251_v19  ;;  %2117 = vmatprep.mubr.bf16.mxu0 %v3930_v24  ;;  %v3332_v19 = vld [vmem:[%s4739_s3 + $0x870] ss:$24 sps:$4 sm:$0xff]  }
  0x9a   :  { %2199 = vmatprep.mubr.bf16.mxu1 %v3917_v18  ;;  %2118 = vmatmul.mubr.bf16.vlgmr.msra.gmra.mrb[0].mxu0 %v3936_v26 }
  0x9b   :  { %2127 = vmatpush1.bf16.msra.mxu0 %v3254_v23  ;;  %2158 = vmatprep.mubr.bf16.mxu0 %v3942_v28  ;;  %v3343_v23 = vld [vmem:[%s4739_s3 + $0x2dc] ss:$24 sps:$4 sm:$0xff]  }
  0x9c   :  { %2169 = vmatprep.subr.bf16.mxu1 %v3259_v25  ;;  %2128 = vmatprep.subr.bf16.mxu0 %v3262_v27  ;;  %v3338_v25 = vld [vmem:[%s4739_s3 + $0x8a0] ss:$24 sps:$4 sm:$0xff]   ;;  %v3346_v27 = vld [vmem:[%s4739_s3 + $0x8d4] ss:$24 sps:$4 sm:$0xff]  }
  0x9d   :  { %2170 = vmatpush1.bf16.msra.mxu1 %v3257_v29  ;;  %v3341_v29 = vld [vmem:[%s4739_s3 + $0x2d8] ss:$24 sps:$4 sm:$0xff]  }
  0x9e   :  { %2171 = vmatprep.subr.bf16.mxu1 %v3265_v30  ;;  %v3349_v30 = vld [vmem:[%s4739_s3 + $0x30c] ss:$24 sps:$4 sm:$0xff]  }
  0x9f   :  { %2129 = vmatpush1.bf16.msra.mxu0 %v3260_v31  ;;  %v3344_v31 = vld [vmem:[%s4739_s3 + $0x8d0] ss:$24 sps:$4 sm:$0xff]  }
  0xa0   :  { %2130 = vmatprep.subr.bf16.mxu0 %v3268_v32  ;;  %v3352_v32 = vld [vmem:[%s4739_s3 + $0x14] ss:$24 sps:$4 sm:$0xff]  }
  0xa1   :  { %2172 = vmatpush1.bf16.msra.mxu1 %v3263_v33  ;;  %v3347_v33 = vld [vmem:[%s4739_s3 + $0x308] ss:$24 sps:$4 sm:$0xff]  }
  0xa2   :  { %2173 = vmatprep.subr.bf16.mxu1 %v3271_v34  ;;  %v3355_v34 = vld [vmem:[%s4739_s3 + $0x33c] ss:$24 sps:$4 sm:$0xff]  }
  0xa3   :  { %2131 = vmatpush1.bf16.msra.mxu0 %v3266_v35  ;;  %v3350_v35 = vld [vmem:[%s4739_s3 + $0x10] ss:$24 sps:$4 sm:$0xff]  }
  0xa4   :  { %2132 = vmatprep.subr.bf16.mxu0 %v3274_v36  ;;  %v4138_v36 = vpack.c.bf16 %v3915_v15, %v3915_v15  ;;  %v3361_v15 = vld [vmem:[%s4739_s3 + $0x36c] ss:$24 sps:$4 sm:$0xff]  }
  0xa5   :  { %2174 = vmatpush1.bf16.msra.mxu1 %v3269_v37  ;;  %v3358_v37 = vld [vmem:[%s4739_s3 + $0x44] ss:$24 sps:$4 sm:$0xff]  }
  0xa6   :  { %2175 = vmatprep.subr.bf16.mxu1 %v3277_v38  ;;  %v3353_v38 = vld [vmem:[%s4739_s3 + $0x338] ss:$24 sps:$4 sm:$0xff]  }
  0xa7   :  { %2133 = vmatpush1.bf16.msra.mxu0 %v3272_v39  ;;  %v3356_v39 = vld [vmem:[%s4739_s3 + $0x40] ss:$24 sps:$4 sm:$0xff]  }
  0xa8   :  { %2134 = vmatprep.subr.bf16.mxu0 %v3280_v40  ;;  %v3364_v40 = vld [vmem:[%s4739_s3 + $0x74] ss:$24 sps:$4 sm:$0xff]  }
  0xa9   :  { %2176 = vmatpush1.bf16.msra.mxu1 %v3275_v41  ;;  %v3359_v41 = vld [vmem:[%s4739_s3 + $0x368] ss:$24 sps:$4 sm:$0xff]  }
  0xaa   :  { %2177 = vmatprep.subr.bf16.mxu1 %v3283_v42  ;;  %v3367_v42 = vld [vmem:[%s4739_s3 + $0x39c] ss:$24 sps:$4 sm:$0xff]  }
  0xab   :  { %2135 = vmatpush1.bf16.msra.mxu0 %v3278_v43  ;;  %v3370_v43 = vld [vmem:[%s4739_s3 + $0xa4] ss:$24 sps:$4 sm:$0xff]  }
  0xac   :  { %2136 = vmatprep.subr.bf16.mxu0 %v3286_v44  ;;  %v3365_v44 = vld [vmem:[%s4739_s3 + $0x398] ss:$24 sps:$4 sm:$0xff]  }
  0xad   :  { %2178 = vmatpush1.bf16.msra.mxu1 %v3281_v45  ;;  %v3373_v45 = vld [vmem:[%s4739_s3 + $0x3cc] ss:$24 sps:$4 sm:$0xff]  }
  0xae   :  { %2179 = vmatprep.subr.bf16.mxu1 %v3289_v46  ;;  %v3368_v46 = vld [vmem:[%s4739_s3 + $0xa0] ss:$24 sps:$4 sm:$0xff]  }
  0xaf   :  { %2137 = vmatpush1.bf16.msra.mxu0 %v3284_v47  ;;  %v3376_v47 = vld [vmem:[%s4739_s3 + $0xd4] ss:$24 sps:$4 sm:$0xff]  }
  0xb0   :  { %2138 = vmatprep.subr.bf16.mxu0 %v3292_v48  ;;  %v3371_v48 = vld [vmem:[%s4739_s3 + $0x3c8] ss:$24 sps:$4 sm:$0xff]  }
  0xb1   :  { %2180 = vmatpush1.bf16.msra.mxu1 %v3287_v49  ;;  %v3379_v49 = vld [vmem:[%s4739_s3 + $0x3fc] ss:$24 sps:$4 sm:$0xff]  }
  0xb2   :  { %2181 = vmatprep.subr.bf16.mxu1 %v3295_v50  ;;  %v3374_v50 = vld [vmem:[%s4739_s3 + $0xd0] ss:$24 sps:$4 sm:$0xff]  }
  0xb3   :  { %2139 = vmatpush1.bf16.msra.mxu0 %v3290_v52  ;;  %v3382_v52 = vld [vmem:[%s4739_s3 + $0x104] ss:$24 sps:$4 sm:$0xff]  }
  0xb4   :  { %2140 = vmatprep.subr.bf16.mxu0 %v3298_v53  ;;  %v3377_v53 = vld [vmem:[%s4739_s3 + $0x3f8] ss:$24 sps:$4 sm:$0xff]  }
  0xb5   :  { %2182 = vmatpush1.bf16.msra.mxu1 %v3293_v54  ;;  %v3385_v54 = vld [vmem:[%s4739_s3 + $0x42c] ss:$24 sps:$4 sm:$0xff]  }
  0xb6   :  { %2183 = vmatprep.subr.bf16.mxu1 %v3301_v55  ;;  %v3380_v55 = vld [vmem:[%s4739_s3 + $0x100] ss:$24 sps:$4 sm:$0xff]  }
  0xb7   :  { %2141 = vmatpush1.bf16.msra.mxu0 %v3296_v56  ;;  %v3388_v56 = vld [vmem:[%s4739_s3 + $0x134] ss:$24 sps:$4 sm:$0xff]  }
  0xb8   :  { %2142 = vmatprep.subr.bf16.mxu0 %v3304_v57  ;;  %v3383_v57 = vld [vmem:[%s4739_s3 + $0x428] ss:$24 sps:$4 sm:$0xff]  }
  0xb9   :  { %2184 = vmatpush1.bf16.msra.mxu1 %v3299_v58  ;;  %v3391_v58 = vld [vmem:[%s4739_s3 + $0x45c] ss:$24 sps:$4 sm:$0xff]  }
  0xba   :  { %2185 = vmatprep.subr.bf16.mxu1 %v3307_v59  ;;  %v3386_v59 = vld [vmem:[%s4739_s3 + $0x130] ss:$24 sps:$4 sm:$0xff]  }
  0xbb   :  { %2143 = vmatpush1.bf16.msra.mxu0 %v3302_v60  ;;  %v3389_v60 = vld [vmem:[%s4739_s3 + $0x458] ss:$24 sps:$4 sm:$0xff]  }
  0xbc   :  { %2144 = vmatprep.subr.bf16.mxu0 %v3310_v61  ;;  %v3394_v61 = vld [vmem:[%s4739_s3 + $0x164] ss:$24 sps:$4 sm:$0xff]  }
  0xbd   :  { %2186 = vmatpush1.bf16.msra.mxu1 %v3305_v62  ;;  %v3397_v62 = vld [vmem:[%s4739_s3 + $0x48c] ss:$24 sps:$4 sm:$0xff]  }
  0xbe   :  { %2187 = vmatprep.subr.bf16.mxu1 %v3313_v63  ;;  %v3392_v63 = vld [vmem:[%s4739_s3 + $0x160] ss:$24 sps:$4 sm:$0xff]  }
  0xbf   :  { %2145 = vmatpush1.bf16.msra.mxu0 %v3308_v1  ;;  %v3395_v1 = vld [vmem:[%s4739_s3 + $0x488] ss:$24 sps:$4 sm:$0xff]  }
  0xc0   :  { %2146 = vmatprep.subr.bf16.mxu0 %v3316_v2  ;;  %v3400_v2 = vld [vmem:[%s4739_s3 + $0x194] ss:$24 sps:$4 sm:$0xff]  }
  0xc1   :  { %2188 = vmatpush1.bf16.msra.mxu1 %v3311_v3  ;;  %v3403_v3 = vld [vmem:[%s4739_s3 + $0x4bc] ss:$24 sps:$4 sm:$0xff]  }
  0xc2   :  { %2189 = vmatprep.subr.bf16.mxu1 %v3319_v4  ;;  %v3398_v4 = vld [vmem:[%s4739_s3 + $0x190] ss:$24 sps:$4 sm:$0xff]  }
  0xc3   :  { %2147 = vmatpush1.bf16.msra.mxu0 %v3314_v5  ;;  %v3406_v5 = vld [vmem:[%s4739_s3 + $0x1c4] ss:$24 sps:$4 sm:$0xff]  }
  0xc4   :  { %2148 = vmatprep.subr.bf16.mxu0 %v3322_v6  ;;  %v3401_v6 = vld [vmem:[%s4739_s3 + $0x4b8] ss:$24 sps:$4 sm:$0xff]  }
  0xc5   :  { %2190 = vmatpush1.bf16.msra.mxu1 %v3317_v7  ;;  %v3409_v7 = vld [vmem:[%s4739_s3 + $0x4ec] ss:$24 sps:$4 sm:$0xff]  }
  0xc6   :  { %2191 = vmatprep.subr.bf16.mxu1 %v3325_v8  ;;  %v3404_v8 = vld [vmem:[%s4739_s3 + $0x1c0] ss:$24 sps:$4 sm:$0xff]  }
  0xc7   :  { %2149 = vmatpush1.bf16.msra.mxu0 %v3320_v9  ;;  %v3412_v9 = vld [vmem:[%s4739_s3 + $0x1f4] ss:$24 sps:$4 sm:$0xff]  }
  0xc8   :  { %2150 = vmatprep.subr.bf16.mxu0 %v3328_v10  ;;  %v3407_v10 = vld [vmem:[%s4739_s3 + $0x4e8] ss:$24 sps:$4 sm:$0xff]  }
  0xc9   :  { %2192 = vmatpush1.bf16.msra.mxu1 %v3323_v11  ;;  %v3415_v11 = vld [vmem:[%s4739_s3 + $0x51c] ss:$24 sps:$4 sm:$0xff]  }
  0xca   :  { %2193 = vmatprep.subr.bf16.mxu1 %v3331_v12  ;;  %v3410_v12 = vld [vmem:[%s4739_s3 + $0x1f0] ss:$24 sps:$4 sm:$0xff]  }
  0xcb   :  { %2151 = vmatpush1.bf16.msra.mxu0 %v3326_v13  ;;  %v3418_v13 = vld [vmem:[%s4739_s3 + $0x224] ss:$24 sps:$4 sm:$0xff]  }
  0xcc   :  { %2152 = vmatprep.subr.bf16.mxu0 %v3334_v14  ;;  %v3413_v14 = vld [vmem:[%s4739_s3 + $0x518] ss:$24 sps:$4 sm:$0xff]  }
  0xcd   :  { %2194 = vmatpush1.bf16.msra.mxu1 %v3329_v16  ;;  %v3421_v16 = vld [vmem:[%s4739_s3 + $0x54c] ss:$24 sps:$4 sm:$0xff]  }
  0xce   :  { %2195 = vmatprep.subr.bf16.mxu1 %v3337_v17  ;;  %v3416_v17 = vld [vmem:[%s4739_s3 + $0x220] ss:$24 sps:$4 sm:$0xff]  }
  0xcf   :  { %2153 = vmatpush1.bf16.msra.mxu0 %v3332_v19  ;;  %v3424_v19 = vld [vmem:[%s4739_s3 + $0x254] ss:$24 sps:$4 sm:$0xff]  }
  0xd0   :  { %2154 = vmatprep.subr.bf16.mxu0 %v3340_v20  ;;  %v3419_v20 = vld [vmem:[%s4739_s3 + $0x548] ss:$24 sps:$4 sm:$0xff]  }
  0xd1   :  { %2196 = vmatpush1.bf16.msra.mxu1 %v3335_v21  ;;  %v3427_v21 = vld [vmem:[%s4739_s3 + $0x57c] ss:$24 sps:$4 sm:$0xff]  }
  0xd2   :  { %2197 = vmatprep.subr.bf16.mxu1 %v3343_v23  ;;  %v3422_v23 = vld [vmem:[%s4739_s3 + $0x250] ss:$24 sps:$4 sm:$0xff]  }
  0xd3   :  { %2155 = vmatpush1.bf16.msra.mxu0 %v3338_v25  ;;  %v3430_v25 = vld [vmem:[%s4739_s3 + $0x284] ss:$24 sps:$4 sm:$0xff]  }
  0xd4   :  { %2156 = vmatprep.subr.bf16.mxu0 %v3346_v27  ;;  %v3425_v27 = vld [vmem:[%s4739_s3 + $0x578] ss:$24 sps:$4 sm:$0xff]  }
  0xd5   :  { %2198 = vmatpush1.bf16.msra.mxu1 %v3341_v29  ;;  %v3433_v29 = vld [vmem:[%s4739_s3 + $0x5ac] ss:$24 sps:$4 sm:$0xff]  }
  0xd6   :  { %2208 = vmatprep.subr.bf16.mxu1 %v3349_v30  ;;  %v3428_v30 = vld [vmem:[%s4739_s3 + $0x280] ss:$24 sps:$4 sm:$0xff]  }
  0xd7   :  { %2157 = vmatpush1.bf16.msra.mxu0 %v3344_v31  ;;  %v3436_v31 = vld [vmem:[%s4739_s3 + $0x2b4] ss:$24 sps:$4 sm:$0xff]  }
  0xd8   :  { %2200 = vmatmul.mubr.bf16.vlgmr.msra.gmra.mrb[4].mxu1 %v3924_v22  ;;  %2290 = vmatprep.subr.bf16.mxu0 %v3352_v32  ;;  %v3431_v32 = vld [vmem:[%s4739_s3 + $0x5a8] ss:$24 sps:$4 sm:$0xff]  }
  0xd9   :  { %2209 = vmatpush1.bf16.msra.mxu1 %v3347_v33  ;;  %2240 = vmatprep.mubr.bf16.mxu1 %v3930_v24  ;;  %v3439_v33 = vld [vmem:[%s4739_s3 + $0x5dc] ss:$24 sps:$4 sm:$0xff]  }
  0xda   :  { %2159 = vmatmul.mubr.bf16.vlgmr.msra.gmra.mrb[0].mxu0 %v4138_v36  ;;  %2210 = vmatprep.subr.bf16.mxu1 %v3355_v34  ;;  %v3434_v34 = vld [vmem:[%s4739_s3 + $0x2b0] ss:$24 sps:$4 sm:$0xff]  }
  0xdb   :  { %2291 = vmatpush1.bf16.msra.mxu0 %v3350_v35  ;;  %2322 = vmatprep.mubr.bf16.mxu0 %v3917_v18  ;;  %v3362_v18 = vld [vmem:[%s4739_s3 + $0x70] ss:$24 sps:$4 sm:$0xff]   ;;  %v3442_v35 = vld [vmem:[%s4739_s3 + $0x2e4] ss:$24 sps:$4 sm:$0xff]  }
  0xdc   :  { %2292 = vmatprep.subr.bf16.mxu0 %v3358_v37  ;;  %v3437_v37 = vld [vmem:[%s4739_s3 + $0x5d8] ss:$24 sps:$4 sm:$0xff]  }
  0xdd   :  { %2211 = vmatpush1.bf16.msra.mxu1 %v3353_v38  ;;  %v3445_v38 = vld [vmem:[%s4739_s3 + $0x60c] ss:$24 sps:$4 sm:$0xff]  }
  0xde   :  { %2212 = vmatprep.subr.bf16.mxu1 %v3361_v15  ;;  %v3440_v15 = vld [vmem:[%s4739_s3 + $0x2e0] ss:$24 sps:$4 sm:$0xff]  }
  0xdf   :  { %2293 = vmatpush1.bf16.msra.mxu0 %v3356_v39  ;;  %v3448_v39 = vld [vmem:[%s4739_s3 + $0x314] ss:$24 sps:$4 sm:$0xff]  }
  0xe0   :  { %2294 = vmatprep.subr.bf16.mxu0 %v3364_v40  ;;  %v3443_v40 = vld [vmem:[%s4739_s3 + $0x608] ss:$24 sps:$4 sm:$0xff]  }
  0xe1   :  { %2213 = vmatpush1.bf16.msra.mxu1 %v3359_v41  ;;  %v3451_v41 = vld [vmem:[%s4739_s3 + $0x63c] ss:$24 sps:$4 sm:$0xff]  }
  0xe2   :  { %2214 = vmatprep.subr.bf16.mxu1 %v3367_v42  ;;  %v3446_v42 = vld [vmem:[%s4739_s3 + $0x310] ss:$24 sps:$4 sm:$0xff]  }
  0xe3   :  { %2295 = vmatpush1.bf16.msra.mxu0 %v3362_v18  ;;  %v3454_v18 = vld [vmem:[%s4739_s3 + $0x344] ss:$24 sps:$4 sm:$0xff]  }
  0xe4   :  { %2296 = vmatprep.subr.bf16.mxu0 %v3370_v43  ;;  %v3449_v43 = vld [vmem:[%s4739_s3 + $0x638] ss:$24 sps:$4 sm:$0xff]  }
  0xe5   :  { %2215 = vmatpush1.bf16.msra.mxu1 %v3365_v44  ;;  %v3457_v44 = vld [vmem:[%s4739_s3 + $0x66c] ss:$24 sps:$4 sm:$0xff]  }
  0xe6   :  { %2216 = vmatprep.subr.bf16.mxu1 %v3373_v45  ;;  %v3452_v45 = vld [vmem:[%s4739_s3 + $0x340] ss:$24 sps:$4 sm:$0xff]  }
  0xe7   :  { %2297 = vmatpush1.bf16.msra.mxu0 %v3368_v46  ;;  %v3460_v46 = vld [vmem:[%s4739_s3 + $0x374] ss:$24 sps:$4 sm:$0xff]  }
  0xe8   :  { %2298 = vmatprep.subr.bf16.mxu0 %v3376_v47  ;;  %v3463_v47 = vld [vmem:[%s4739_s3 + $0x69c] ss:$24 sps:$4 sm:$0xff]  }
  0xe9   :  { %2217 = vmatpush1.bf16.msra.mxu1 %v3371_v48  ;;  %v3466_v48 = vld [vmem:[%s4739_s3 + $0x3a4] ss:$24 sps:$4 sm:$0xff]  }
  0xea   :  { %2218 = vmatprep.subr.bf16.mxu1 %v3379_v49  ;;  %v3461_v49 = vld [vmem:[%s4739_s3 + $0x698] ss:$24 sps:$4 sm:$0xff]  }
  0xeb   :  { %2299 = vmatpush1.bf16.msra.mxu0 %v3374_v50  ;;  %v3469_v50 = vld [vmem:[%s4739_s3 + $0x6cc] ss:$24 sps:$4 sm:$0xff]  }
  0xec   :  { %2300 = vmatprep.subr.bf16.mxu0 %v3382_v52  ;;  %v3464_v52 = vld [vmem:[%s4739_s3 + $0x3a0] ss:$24 sps:$4 sm:$0xff]  }
  0xed   :  { %2219 = vmatpush1.bf16.msra.mxu1 %v3377_v53  ;;  %v3472_v53 = vld [vmem:[%s4739_s3 + $0x3d4] ss:$24 sps:$4 sm:$0xff]  }
  0xee   :  { %2220 = vmatprep.subr.bf16.mxu1 %v3385_v54  ;;  %v3467_v54 = vld [vmem:[%s4739_s3 + $0x6c8] ss:$24 sps:$4 sm:$0xff]  }
  0xef   :  { %2301 = vmatpush1.bf16.msra.mxu0 %v3380_v55  ;;  %v3475_v55 = vld [vmem:[%s4739_s3 + $0x6fc] ss:$24 sps:$4 sm:$0xff]  }
  0xf0   :  { %2302 = vmatprep.subr.bf16.mxu0 %v3388_v56  ;;  %v3470_v56 = vld [vmem:[%s4739_s3 + $0x3d0] ss:$24 sps:$4 sm:$0xff]  }
  0xf1   :  { %2221 = vmatpush1.bf16.msra.mxu1 %v3383_v57  ;;  %v3478_v57 = vld [vmem:[%s4739_s3 + $0x404] ss:$24 sps:$4 sm:$0xff]  }
  0xf2   :  { %2222 = vmatprep.subr.bf16.mxu1 %v3391_v58  ;;  %v3473_v58 = vld [vmem:[%s4739_s3 + $0x6f8] ss:$24 sps:$4 sm:$0xff]  }
  0xf3   :  { %2303 = vmatpush1.bf16.msra.mxu0 %v3386_v59  ;;  %v3481_v59 = vld [vmem:[%s4739_s3 + $0x72c] ss:$24 sps:$4 sm:$0xff]  }
  0xf4   :  { %2304 = vmatprep.subr.bf16.mxu0 %v3394_v61  ;;  %v3484_v61 = vld [vmem:[%s4739_s3 + $0x434] ss:$24 sps:$4 sm:$0xff]  }
  0xf5   :  { %2223 = vmatpush1.bf16.msra.mxu1 %v3389_v60  ;;  %v3476_v60 = vld [vmem:[%s4739_s3 + $0x400] ss:$24 sps:$4 sm:$0xff]  }
  0xf6   :  { %2224 = vmatprep.subr.bf16.mxu1 %v3397_v62  ;;  %v3479_v62 = vld [vmem:[%s4739_s3 + $0x728] ss:$24 sps:$4 sm:$0xff]  }
  0xf7   :  { %2305 = vmatpush1.bf16.msra.mxu0 %v3392_v63  ;;  %v3487_v63 = vld [vmem:[%s4739_s3 + $0x75c] ss:$24 sps:$4 sm:$0xff]  }
  0xf8   :  { %2306 = vmatprep.subr.bf16.mxu0 %v3400_v2  ;;  %v3490_v2 = vld [vmem:[%s4739_s3 + $0x464] ss:$24 sps:$4 sm:$0xff]  }
  0xf9   :  { %2225 = vmatpush1.bf16.msra.mxu1 %v3395_v1  ;;  %v3482_v1 = vld [vmem:[%s4739_s3 + $0x430] ss:$24 sps:$4 sm:$0xff]  }
  0xfa   :  { %2226 = vmatprep.subr.bf16.mxu1 %v3403_v3  ;;  %v3485_v3 = vld [vmem:[%s4739_s3 + $0x758] ss:$24 sps:$4 sm:$0xff]  }
  0xfb   :  { %2307 = vmatpush1.bf16.msra.mxu0 %v3398_v4  ;;  %v3493_v4 = vld [vmem:[%s4739_s3 + $0x78c] ss:$24 sps:$4 sm:$0xff]  }
  0xfc   :  { %2308 = vmatprep.subr.bf16.mxu0 %v3406_v5  ;;  %v3488_v5 = vld [vmem:[%s4739_s3 + $0x460] ss:$24 sps:$4 sm:$0xff]  }
  0xfd   :  { %2227 = vmatpush1.bf16.msra.mxu1 %v3401_v6  ;;  %v3496_v6 = vld [vmem:[%s4739_s3 + $0x494] ss:$24 sps:$4 sm:$0xff]  }
  0xfe   :  { %2228 = vmatprep.subr.bf16.mxu1 %v3409_v7  ;;  %v3491_v7 = vld [vmem:[%s4739_s3 + $0x788] ss:$24 sps:$4 sm:$0xff]  }
  0xff   :  { %2309 = vmatpush1.bf16.msra.mxu0 %v3404_v8  ;;  %v3499_v8 = vld [vmem:[%s4739_s3 + $0x7bc] ss:$24 sps:$4 sm:$0xff]  }
 0x100   :  { %2310 = vmatprep.subr.bf16.mxu0 %v3412_v9  ;;  %v3494_v9 = vld [vmem:[%s4739_s3 + $0x490] ss:$24 sps:$4 sm:$0xff]  }
 0x101   :  { %2229 = vmatpush1.bf16.msra.mxu1 %v3407_v10  ;;  %v3502_v10 = vld [vmem:[%s4739_s3 + $0x4c4] ss:$24 sps:$4 sm:$0xff]  }
 0x102   :  { %2230 = vmatprep.subr.bf16.mxu1 %v3415_v11  ;;  %v3497_v11 = vld [vmem:[%s4739_s3 + $0x7b8] ss:$24 sps:$4 sm:$0xff]  }
 0x103   :  { %2311 = vmatpush1.bf16.msra.mxu0 %v3410_v12  ;;  %v3505_v12 = vld [vmem:[%s4739_s3 + $0x7ec] ss:$24 sps:$4 sm:$0xff]  }
 0x104   :  { %2312 = vmatprep.subr.bf16.mxu0 %v3418_v13  ;;  %v3500_v13 = vld [vmem:[%s4739_s3 + $0x4c0] ss:$24 sps:$4 sm:$0xff]  }
 0x105   :  { %2231 = vmatpush1.bf16.msra.mxu1 %v3413_v14  ;;  %v3508_v14 = vld [vmem:[%s4739_s3 + $0x4f4] ss:$24 sps:$4 sm:$0xff]  }
 0x106   :  { %2232 = vmatprep.subr.bf16.mxu1 %v3421_v16  ;;  %v3503_v16 = vld [vmem:[%s4739_s3 + $0x7e8] ss:$24 sps:$4 sm:$0xff]  }
 0x107   :  { %2313 = vmatpush1.bf16.msra.mxu0 %v3416_v17  ;;  %v3511_v17 = vld [vmem:[%s4739_s3 + $0x81c] ss:$24 sps:$4 sm:$0xff]  }
 0x108   :  { %2314 = vmatprep.subr.bf16.mxu0 %v3424_v19  ;;  %v3506_v19 = vld [vmem:[%s4739_s3 + $0x4f0] ss:$24 sps:$4 sm:$0xff]  }
 0x109   :  { %2233 = vmatpush1.bf16.msra.mxu1 %v3419_v20  ;;  %v3514_v20 = vld [vmem:[%s4739_s3 + $0x524] ss:$24 sps:$4 sm:$0xff]  }
 0x10a   :  { %2234 = vmatprep.subr.bf16.mxu1 %v3427_v21  ;;  %v3509_v21 = vld [vmem:[%s4739_s3 + $0x818] ss:$24 sps:$4 sm:$0xff]  }
 0x10b   :  { %2315 = vmatpush1.bf16.msra.mxu0 %v3422_v23  ;;  %v3517_v23 = vld [vmem:[%s4739_s3 + $0x84c] ss:$24 sps:$4 sm:$0xff]  }
 0x10c   :  { %2316 = vmatprep.subr.bf16.mxu0 %v3430_v25  ;;  %v3512_v25 = vld [vmem:[%s4739_s3 + $0x520] ss:$24 sps:$4 sm:$0xff]  }
 0x10d   :  { %2235 = vmatpush1.bf16.msra.mxu1 %v3425_v27  ;;  %v3520_v27 = vld [vmem:[%s4739_s3 + $0x554] ss:$24 sps:$4 sm:$0xff]  }
 0x10e   :  { %2236 = vmatprep.subr.bf16.mxu1 %v3433_v29  ;;  %v3515_v29 = vld [vmem:[%s4739_s3 + $0x848] ss:$24 sps:$4 sm:$0xff]  }
 0x10f   :  { %2317 = vmatpush1.bf16.msra.mxu0 %v3428_v30  ;;  %v3523_v30 = vld [vmem:[%s4739_s3 + $0x87c] ss:$24 sps:$4 sm:$0xff]  }
 0x110   :  { %2318 = vmatprep.subr.bf16.mxu0 %v3436_v31  ;;  %v3518_v31 = vld [vmem:[%s4739_s3 + $0x550] ss:$24 sps:$4 sm:$0xff]  }
 0x111   :  { %2237 = vmatpush1.bf16.msra.mxu1 %v3431_v32  ;;  %v3526_v32 = vld [vmem:[%s4739_s3 + $0x584] ss:$24 sps:$4 sm:$0xff]  }
 0x112   :  { %2238 = vmatprep.subr.bf16.mxu1 %v3439_v33  ;;  %v3521_v33 = vld [vmem:[%s4739_s3 + $0x878] ss:$24 sps:$4 sm:$0xff]  }
 0x113   :  { %2319 = vmatpush1.bf16.msra.mxu0 %v3434_v34  ;;  %v3529_v34 = vld [vmem:[%s4739_s3 + $0x8ac] ss:$24 sps:$4 sm:$0xff]  }
 0x114   :  { %2320 = vmatprep.subr.bf16.mxu0 %v3442_v35  ;;  %v3524_v35 = vld [vmem:[%s4739_s3 + $0x580] ss:$24 sps:$4 sm:$0xff]  }
 0x115   :  { %2239 = vmatpush1.bf16.msra.mxu1 %v3437_v37  ;;  %v3532_v37 = vld [vmem:[%s4739_s3 + $0x5b4] ss:$24 sps:$4 sm:$0xff]  }
 0x116   :  { %2249 = vmatprep.subr.bf16.mxu1 %v3445_v38  ;;  %v3527_v38 = vld [vmem:[%s4739_s3 + $0x8a8] ss:$24 sps:$4 sm:$0xff]  }
 0x117   :  { %2321 = vmatpush1.bf16.msra.mxu0 %v3440_v15  ;;  %v3535_v15 = vld [vmem:[%s4739_s3 + $0x8dc] ss:$24 sps:$4 sm:$0xff]  }
 0x118   :  { %2241 = vmatmul.mubr.bf16.vlgmr.msra.gmra.mrb[4].mxu1 %v3936_v26  ;;  %2331 = vmatprep.subr.bf16.mxu0 %v3448_v39  ;;  %v3530_v39 = vld [vmem:[%s4739_s3 + $0x5b0] ss:$24 sps:$4 sm:$0xff]  }
 0x119   :  { %2250 = vmatpush1.bf16.msra.mxu1 %v3443_v40  ;;  %2281 = vmatprep.mubr.bf16.mxu1 %v3942_v28  ;;  %v3538_v40 = vld [vmem:[%s4739_s3 + $0x5e4] ss:$24 sps:$4 sm:$0xff]  }
 0x11a   :  { %2323 = vmatmul.mubr.bf16.vlgmr.msra.gmra.mrb[4].mxu0 %v3924_v22  ;;  %2251 = vmatprep.subr.bf16.mxu1 %v3451_v41  ;;  %v3455_v22 = vld [vmem:[%s4739_s3 + $0x668] ss:$24 sps:$4 sm:$0xff]   ;;  %v3533_v41 = vld [vmem:[%s4739_s3 + $0x8d8] ss:$24 sps:$4 sm:$0xff]  }
 0x11b   :  { %2332 = vmatpush1.bf16.msra.mxu0 %v3446_v42  ;;  %2363 = vmatprep.mubr.bf16.mxu0 %v3930_v24  ;;  %v3458_v24 = vld [vmem:[%s4739_s3 + $0x370] ss:$24 sps:$4 sm:$0xff]   ;;  %v3559_v42 = vld [vmem:[%s4741_s5 + $0x4] ss:$24 sps:$4 sm:$0xff]  }
 0x11c   :  { %2333 = vmatprep.subr.bf16.mxu0 %v3454_v18  ;;  %v3536_v18 = vld [vmem:[%s4739_s3 + $0x5e0] ss:$24 sps:$4 sm:$0xff]  }
 0x11d   :  { %2252 = vmatpush1.bf16.msra.mxu1 %v3449_v43  ;;  %v3541_v43 = vld [vmem:[%s4739_s3 + $0x614] ss:$24 sps:$4 sm:$0xff]  }
 0x11e   :  { %2253 = vmatprep.subr.bf16.mxu1 %v3457_v44  ;;  %v3557_v44 = vld [vmem:[%s4741_s5] ss:$24 sps:$4 sm:$0xff]  }
 0x11f   :  { %2334 = vmatpush1.bf16.msra.mxu0 %v3452_v45  ;;  %v3565_v45 = vld [vmem:[%s4741_s5 + $0x34] ss:$24 sps:$4 sm:$0xff]  }
 0x120   :  { %2335 = vmatprep.subr.bf16.mxu0 %v3460_v46  ;;  %v3539_v46 = vld [vmem:[%s4739_s3 + $0x610] ss:$24 sps:$4 sm:$0xff]  }
 0x121   :  { %2254 = vmatpush1.bf16.msra.mxu1 %v3455_v22  ;;  %v3544_v22 = vld [vmem:[%s4739_s3 + $0x644] ss:$24 sps:$4 sm:$0xff]  }
 0x122   :  { %2255 = vmatprep.subr.bf16.mxu1 %v3463_v47  ;;  %v3563_v47 = vld [vmem:[%s4741_s5 + $0x30] ss:$24 sps:$4 sm:$0xff]  }
 0x123   :  { %2336 = vmatpush1.bf16.msra.mxu0 %v3458_v24  ;;  %v3571_v24 = vld [vmem:[%s4741_s5 + $0x64] ss:$24 sps:$4 sm:$0xff]  }
 0x124   :  { %2337 = vmatprep.subr.bf16.mxu0 %v3466_v48  ;;  %v3542_v48 = vld [vmem:[%s4739_s3 + $0x640] ss:$24 sps:$4 sm:$0xff]  }
 0x125   :  { %2256 = vmatpush1.bf16.msra.mxu1 %v3461_v49  ;;  %v3547_v49 = vld [vmem:[%s4739_s3 + $0x674] ss:$24 sps:$4 sm:$0xff]  }
 0x126   :  { %2257 = vmatprep.subr.bf16.mxu1 %v3469_v50  ;;  %v3577_v50 = vld [vmem:[%s4741_s5 + $0xc] ss:$24 sps:$4 sm:$0xff]  }
 0x127   :  { %2338 = vmatpush1.bf16.msra.mxu0 %v3464_v52  ;;  %v3550_v52 = vld [vmem:[%s4739_s3 + $0x6a4] ss:$24 sps:$4 sm:$0xff]  }
 0x128   :  { %2339 = vmatprep.subr.bf16.mxu0 %v3472_v53  ;;  %v3575_v53 = vld [vmem:[%s4741_s5 + $0x8] ss:$24 sps:$4 sm:$0xff]  }
 0x129   :  { %2258 = vmatpush1.bf16.msra.mxu1 %v3467_v54  ;;  %v2419_v54 = vld [vmem:[%s4742_s2] sm:$0x1] }
 0x12a   :  { %2259 = vmatprep.subr.bf16.mxu1 %v3475_v55  ;;  %v3583_v55 = vld [vmem:[%s4741_s5 + $0x3c] ss:$24 sps:$4 sm:$0xff]  }
 0x12b   :  { %2340 = vmatpush1.bf16.msra.mxu0 %v3470_v56  ;;  %v3548_v56 = vld [vmem:[%s4739_s3 + $0x6a0] ss:$24 sps:$4 sm:$0xff]  }
 0x12c   :  { %2341 = vmatprep.subr.bf16.mxu0 %v3478_v57  ;;  %v3553_v57 = vld [vmem:[%s4739_s3 + $0x6d4] ss:$24 sps:$4 sm:$0xff]  }
 0x12d   :  { %2260 = vmatpush1.bf16.msra.mxu1 %v3473_v58  ;;  %v3581_v58 = vld [vmem:[%s4741_s5 + $0x38] ss:$24 sps:$4 sm:$0xff]  }
 0x12e   :  { %2261 = vmatprep.subr.bf16.mxu1 %v3481_v59  ;;  %v3589_v59 = vld [vmem:[%s4741_s5 + $0x6c] ss:$24 sps:$4 sm:$0xff]  }
 0x12f   :  { %2342 = vmatpush1.bf16.msra.mxu0 %v3476_v60  ;;  %v3551_v60 = vld [vmem:[%s4739_s3 + $0x6d0] ss:$24 sps:$4 sm:$0xff]  }
 0x130   :  { %2343 = vmatprep.subr.bf16.mxu0 %v3484_v61  ;;  %v3556_v61 = vld [vmem:[%s4739_s3 + $0x704] ss:$24 sps:$4 sm:$0xff]  }
 0x131   :  { %2262 = vmatpush1.bf16.msra.mxu1 %v3479_v62  ;;  %v3587_v62 = vld [vmem:[%s4741_s5 + $0x68] ss:$24 sps:$4 sm:$0xff]  }
 0x132   :  { %2263 = vmatprep.subr.bf16.mxu1 %v3487_v63  ;;  %v3595_v63 = vld [vmem:[%s4741_s5 + $0x14] ss:$24 sps:$4 sm:$0xff]  }
 0x133   :  { %2344 = vmatpush1.bf16.msra.mxu0 %v3482_v1 }
 0x134   :  { %2345 = vmatprep.subr.bf16.mxu0 %v3490_v2  ;;  %v3554_v2 = vld [vmem:[%s4739_s3 + $0x700] ss:$24 sps:$4 sm:$0xff]  }
 0x135   :  { %2264 = vmatpush1.bf16.msra.mxu1 %v3485_v3 }
 0x136   :  { %2265 = vmatprep.subr.bf16.mxu1 %v3493_v4  ;;  %v3562_v4 = vld [vmem:[%s4739_s3 + $0x734] ss:$24 sps:$4 sm:$0xff]  }
 0x137   :  { %2346 = vmatpush1.bf16.msra.mxu0 %v3488_v5 }
 0x138   :  { %2347 = vmatprep.subr.bf16.mxu0 %v3496_v6  ;;  %v3593_v6 = vld [vmem:[%s4741_s5 + $0x10] ss:$24 sps:$4 sm:$0xff]  }
 0x139   :  { %2266 = vmatpush1.bf16.msra.mxu1 %v3491_v7 }
 0x13a   :  { %2267 = vmatprep.subr.bf16.mxu1 %v3499_v8  ;;  %v3601_v8 = vld [vmem:[%s4741_s5 + $0x44] ss:$24 sps:$4 sm:$0xff]  }
 0x13b   :  { %2348 = vmatpush1.bf16.msra.mxu0 %v3494_v9  ;;  %v3560_v9 = vld [vmem:[%s4739_s3 + $0x730] ss:$24 sps:$4 sm:$0xff]  }
 0x13c   :  { %2349 = vmatprep.subr.bf16.mxu0 %v3502_v10  ;;  %v3568_v10 = vld [vmem:[%s4739_s3 + $0x764] ss:$24 sps:$4 sm:$0xff]  }
 0x13d   :  { %2268 = vmatpush1.bf16.msra.mxu1 %v3497_v11  ;;  %v3599_v11 = vld [vmem:[%s4741_s5 + $0x40] ss:$24 sps:$4 sm:$0xff]  }
 0x13e   :  { %2269 = vmatprep.subr.bf16.mxu1 %v3505_v12  ;;  %v3607_v12 = vld [vmem:[%s4741_s5 + $0x74] ss:$24 sps:$4 sm:$0xff]  }
 0x13f   :  { %2350 = vmatpush1.bf16.msra.mxu0 %v3500_v13  ;;  %v3566_v13 = vld [vmem:[%s4739_s3 + $0x760] ss:$24 sps:$4 sm:$0xff]  }
 0x140   :  { %2351 = vmatprep.subr.bf16.mxu0 %v3508_v14  ;;  %v3574_v14 = vld [vmem:[%s4739_s3 + $0x794] ss:$24 sps:$4 sm:$0xff]  }
 0x141   :  { %2270 = vmatpush1.bf16.msra.mxu1 %v3503_v16  ;;  %v3572_v16 = vld [vmem:[%s4739_s3 + $0x790] ss:$24 sps:$4 sm:$0xff]  }
 0x142   :  { %2271 = vmatprep.subr.bf16.mxu1 %v3511_v17  ;;  %v3580_v17 = vld [vmem:[%s4739_s3 + $0x7c4] ss:$24 sps:$4 sm:$0xff]  }
 0x143   :  { %2352 = vmatpush1.bf16.msra.mxu0 %v3506_v19  ;;  %v3578_v19 = vld [vmem:[%s4739_s3 + $0x7c0] ss:$24 sps:$4 sm:$0xff]  }
 0x144   :  { %2353 = vmatprep.subr.bf16.mxu0 %v3514_v20  ;;  %v3586_v20 = vld [vmem:[%s4739_s3 + $0x7f4] ss:$24 sps:$4 sm:$0xff]  }
 0x145   :  { %2272 = vmatpush1.bf16.msra.mxu1 %v3509_v21  ;;  %v3584_v21 = vld [vmem:[%s4739_s3 + $0x7f0] ss:$24 sps:$4 sm:$0xff]  }
 0x146   :  { %2273 = vmatprep.subr.bf16.mxu1 %v3517_v23  ;;  %v3592_v23 = vld [vmem:[%s4739_s3 + $0x824] ss:$24 sps:$4 sm:$0xff]  }
 0x147   :  { %2354 = vmatpush1.bf16.msra.mxu0 %v3512_v25  ;;  %v3590_v25 = vld [vmem:[%s4739_s3 + $0x820] ss:$24 sps:$4 sm:$0xff]  }
 0x148   :  { %2355 = vmatprep.subr.bf16.mxu0 %v3520_v27  ;;  %v3598_v27 = vld [vmem:[%s4739_s3 + $0x854] ss:$24 sps:$4 sm:$0xff]  }
 0x149   :  { %2274 = vmatpush1.bf16.msra.mxu1 %v3515_v29  ;;  %v3596_v29 = vld [vmem:[%s4739_s3 + $0x850] ss:$24 sps:$4 sm:$0xff]  }
 0x14a   :  { %2275 = vmatprep.subr.bf16.mxu1 %v3523_v30  ;;  %v3604_v30 = vld [vmem:[%s4739_s3 + $0x884] ss:$24 sps:$4 sm:$0xff]  }
 0x14b   :  { %2356 = vmatpush1.bf16.msra.mxu0 %v3518_v31  ;;  %v3602_v31 = vld [vmem:[%s4739_s3 + $0x880] ss:$24 sps:$4 sm:$0xff]  }
 0x14c   :  { %2357 = vmatprep.subr.bf16.mxu0 %v3526_v32  ;;  %v3610_v32 = vld [vmem:[%s4739_s3 + $0x8b4] ss:$24 sps:$4 sm:$0xff]  }
 0x14d   :  { %2276 = vmatpush1.bf16.msra.mxu1 %v3521_v33  ;;  %v3608_v33 = vld [vmem:[%s4739_s3 + $0x8b0] ss:$24 sps:$4 sm:$0xff]  }
 0x14e   :  { %2277 = vmatprep.subr.bf16.mxu1 %v3529_v34  ;;  %v3613_v34 = vld [vmem:[%s4739_s3 + $0x8e4] ss:$24 sps:$4 sm:$0xff]  }
 0x14f   :  { %2358 = vmatpush1.bf16.msra.mxu0 %v3524_v35  ;;  %v3611_v35 = vld [vmem:[%s4739_s3 + $0x8e0] ss:$24 sps:$4 sm:$0xff]  }
 0x150   :  { %2359 = vmatprep.subr.bf16.mxu0 %v3532_v37  ;;  %v576_v37 = vsub.s32 0, %v3878_v51 }
 0x151   :  { %2278 = vmatpush1.bf16.msra.mxu1 %v3527_v38  ;;  %v4688_v38 = vld [vmem:[%s4743_s4] sm:$0x3f] }
 0x152   :  { %2279 = vmatprep.subr.bf16.mxu1 %v3535_v15  ;;  %v580_v15 = vsub.s32 1, %v3878_v51 }
 0x153   :  { %2360 = vmatpush1.bf16.msra.mxu0 %v3530_v39  ;;  %v577_v39 = vrot.slane %v4688_v38, %v576_v37 }
 0x154   :  { %2361 = vmatprep.subr.bf16.mxu0 %v3538_v40  ;;  %v581_v40 = vrot.slane %v4688_v38, %v580_v15 }
 0x155   :  { %2280 = vmatpush1.bf16.msra.mxu1 %v3533_v41 }
 0x156   :  { %2564 = vmatprep.subr.bf16.mxu1 %v3559_v42 }
 0x157   :  { %2362 = vmatpush1.bf16.msra.mxu0 %v3536_v18 }
 0x158   :  { %2282 = vmatmul.mubr.bf16.vlgmr.msra.gmra.mrb[4].mxu1 %v4138_v36  ;;  %2372 = vmatprep.subr.bf16.mxu0 %v3541_v43 }
 0x159   :  { %2565 = vmatpush1.bf16.msra.mxu1 %v3557_v44  ;;  %2596 = vmatprep.mubr.bf16.mxu1 %v3632_v0 }
 0x15a   :  { %2364 = vmatmul.mubr.bf16.vlgmr.msra.gmra.mrb[4].mxu0 %v3936_v26  ;;  %2566 = vmatprep.subr.bf16.mxu1 %v3565_v45  ;;  %v3569_v26 = vld [vmem:[%s4741_s5 + $0x60] ss:$24 sps:$4 sm:$0xff]  }
 0x15b   :  { %2373 = vmatpush1.bf16.msra.mxu0 %v3539_v46  ;;  %2404 = vmatprep.mubr.bf16.mxu0 %v3942_v28  ;;  %v3545_v28 = vld [vmem:[%s4739_s3 + $0x670] ss:$24 sps:$4 sm:$0xff]  }
 0x15c   :  { %2374 = vmatprep.subr.bf16.mxu0 %v3544_v22  ;;  %v4698_v22 = vld [vmem:[%s4744_s7] sm:$0x3f] }
 0x15d   :  { %2567 = vmatpush1.bf16.msra.mxu1 %v3563_v47  ;;  %v2692_v47 = vrot.slane %v4698_v22, %v576_v37 }
 0x15e   :  { %2568 = vmatprep.subr.bf16.mxu1 %v3571_v24  ;;  %v2696_v24 = vrot.slane %v4698_v22, %v580_v15 }
 0x15f   :  { %2375 = vmatpush1.bf16.msra.mxu0 %v3542_v48 }
 0x160   :  { %2376 = vmatprep.subr.bf16.mxu0 %v3547_v49 }
 0x161   :  { %2569 = vmatpush1.bf16.msra.mxu1 %v3569_v26 }
 0x162   :  { %2605 = vmatprep.subr.bf16.mxu1 %v3577_v50 }
 0x163   :  { %2377 = vmatpush1.bf16.msra.mxu0 %v3545_v28 }
 0x164   :  { %2378 = vmatprep.subr.bf16.mxu0 %v3550_v52  ;;  %3117 = vmatmul.mubr.msk.bf16.vlgmr.msra.gmra.mrb[8].mxu1 %vm2560_vm4, %v2419_v54 }
 0x165   :  { %2606 = vmatpush1.bf16.msra.mxu1 %v3575_v53  ;;  %2637 = vmatprep.mubr.bf16.mxu1 %v3632_v0 }
 0x166   :  { %2607 = vmatprep.subr.bf16.mxu1 %v3583_v55  ;;  %v588_v55 = vsub.s32 3, %v3878_v51 }
 0x167   :  { %2379 = vmatpush1.bf16.msra.mxu0 %v3548_v56 }
 0x168   :  { %2380 = vmatprep.subr.bf16.mxu0 %v3553_v57  ;;  %v589_v57 = vrot.slane %v4688_v38, %v588_v55 }
 0x169   :  { %2608 = vmatpush1.bf16.msra.mxu1 %v3581_v58 }
 0x16a   :  { %2609 = vmatprep.subr.bf16.mxu1 %v3589_v59 }
 0x16b   :  { %2381 = vmatpush1.bf16.msra.mxu0 %v3551_v60  ;;  %v4598_v1 = vpop.f32.mrb[0].mxu1 }
 0x16c   :  { %v4603_v3 = vpop.f32.mrb[1].mxu1  ;;  %2382 = vmatprep.subr.bf16.mxu0 %v3556_v61  ;;  %v2079_v41 = vadd.f32 %v4598_v1, %v577_v39  ;;  %v2438_v1 = vld [vmem:[%s4745_s6] sm:$0x3f] }
 0x16d   :  { %v2082_v5 = vpop.f32.mrb[2].mxu1  ;;  %2610 = vmatpush1.bf16.msra.mxu1 %v3587_v62  ;;  %v2081_v42 = vadd.f32 %v4603_v3, %v581_v40  ;;  %v2443_v3 = vrot.slane %v2438_v1, %v576_v37 }
 0x16e   :  { %v2083_v7 = vpop.f32.mrb[3].mxu1  ;;  %2646 = vmatprep.subr.bf16.mxu1 %v3595_v63 }
 0x16f   :  { %2383 = vmatpush1.bf16.msra.mxu0 %v3554_v2  ;;  %v2739_v2 = vld [vmem:[%s4746_s8] sm:$0x3f]  ;;  %v2704_v7 = vrot.slane %v4698_v22, %v588_v55 }
 0x170   :  { %2384 = vmatprep.subr.bf16.mxu0 %v3562_v4  ;;  %3118 = vmatmul.mubr.msk.bf16.vlgmr.msra.gmra.mrb[12].mxu1 %vm2560_vm4, %v2419_v54  ;;  %v2447_v4 = vrot.slane %v2438_v1, %v580_v15 }
 0x171   :  { %2647 = vmatpush1.bf16.msra.mxu1 %v3593_v6  ;;  %2678 = vmatprep.mubr.bf16.mxu1 %v3632_v0  ;;  %v3605_v0 = vld [vmem:[%s4741_s5 + $0x70] ss:$24 sps:$4 sm:$0xff]   ;;  %v2744_v6 = vrot.slane %v2739_v2, %v576_v37 }
 0x172   :  { %2648 = vmatprep.subr.bf16.mxu1 %v3601_v8 }
 0x173   :  { %2385 = vmatpush1.bf16.msra.mxu0 %v3560_v9  ;;  %v2748_v9 = vrot.slane %v2739_v2, %v580_v15  ;;  %v2756_v15 = vrot.slane %v2739_v2, %v588_v55 }
 0x174   :  { %2386 = vmatprep.subr.bf16.mxu0 %v3568_v10 }
 0x175   :  { %2649 = vmatpush1.bf16.msra.mxu1 %v3599_v11 }
 0x176   :  { %2650 = vmatprep.subr.bf16.mxu1 %v3607_v12 }
 0x177   :  { %2387 = vmatpush1.bf16.msra.mxu0 %v3566_v13 }
 0x178   :  { %2388 = vmatprep.subr.bf16.mxu0 %v3574_v14 }
 0x179   :  { %2651 = vmatpush1.bf16.msra.mxu1 %v3605_v0 }
 0x17b   :  { %2389 = vmatpush1.bf16.msra.mxu0 %v3572_v16 }
 0x17c   :  { %2390 = vmatprep.subr.bf16.mxu0 %v3580_v17  ;;  %3119 = vmatmul.mubr.msk.bf16.vlgmr.msra.gmra.mrb[16].mxu1 %vm2560_vm4, %v2419_v54  ;;  %v584_v54 = vsub.s32 2, %v3878_v51 }
 0x17e   :  { %v585_v56 = vrot.slane %v4688_v38, %v584_v54  ;;  %v2700_v5 = vrot.slane %v4698_v22, %v584_v54 }
 0x17f   :  { %2391 = vmatpush1.bf16.msra.mxu0 %v3578_v19 }
 0x180   :  { %2392 = vmatprep.subr.bf16.mxu0 %v3586_v20 }
 0x183   :  { %2393 = vmatpush1.bf16.msra.mxu0 %v3584_v21 }
 0x184   :  { %2394 = vmatprep.subr.bf16.mxu0 %v3592_v23 }
 0x187   :  { %2395 = vmatpush1.bf16.msra.mxu0 %v3590_v25 }
 0x188   :  { %2396 = vmatprep.subr.bf16.mxu0 %v3598_v27 }
 0x18b   :  { %2397 = vmatpush1.bf16.msra.mxu0 %v3596_v29 }
 0x18c   :  { %2398 = vmatprep.subr.bf16.mxu0 %v3604_v30 }
 0x18f   :  { %2399 = vmatpush1.bf16.msra.mxu0 %v3602_v31 }
 0x190   :  { %2400 = vmatprep.subr.bf16.mxu0 %v3610_v32 }
 0x193   :  { %2401 = vmatpush1.bf16.msra.mxu0 %v3608_v33  ;;  %v2451_v33 = vrot.slane %v2438_v1, %v584_v54 }
 0x194   :  { %2402 = vmatprep.subr.bf16.mxu0 %v3613_v34  ;;  %v2455_v34 = vrot.slane %v2438_v1, %v588_v55 }
 0x197   :  { %2403 = vmatpush1.bf16.msra.mxu0 %v3611_v35  ;;  %v2752_v35 = vrot.slane %v2739_v2, %v584_v54 }
 0x19a   :  { %2405 = vmatmul.mubr.bf16.vlgmr.msra.gmra.mrb[4].mxu0 %v4138_v36 }
 0x1ad   :  { %v2160_v18 = vpop.f32.mrb[0].mxu0 }
 0x1ae   :  { %v3123_v43 = vadd.f32 %v2160_v18, %v2079_v41  ;;  %v2162_v36 = vpop.f32.mrb[1].mxu0 }
 0x1af   :  { %v3125_v44 = vadd.f32 %v2162_v36, %v2081_v42  ;;  %v2164_v45 = vpop.f32.mrb[2].mxu0 }
 0x1b0   :  { %3616 = vtanh.f32 %v3123_v43  ;;  %v2165_v46 = vpop.f32.mrb[3].mxu0  ;;  %v592_v45 = vsub.s32 4, %v3878_v51 }
 0x1b1   :  { %3618 = vtanh.f32 %v3125_v44 }
 0x1ba   :  { %v3617_v48 = vpop.eup %3616 }
 0x1bb   :  { %v3619_v49 = vpop.eup %3618  ;;  %v2719_v26 = vmul.f32 %v3617_v48, %v2692_v47 }
 0x1bc   :  { %v2720_v50 = vmul.f32 %v3619_v49, %v2696_v24  ;;  %v596_v24 = vsub.s32 5, %v3878_v51  ;;  %v2459_v49 = vrot.slane %v2438_v1, %v592_v45  ;;  %v15_v51 = vstv %s4747_s9 }
 0x1bd   :  { %v2726_v28 = vsel %vm2725_vm5, %v2719_v26, 0.0  ;;  %16 = vst [vmem:[#allocation3] sm:$0x1] %v15_v51 }
 0x1be   :  { %v2727_v52 = vsel %vm2725_vm5, %v2720_v50, 0.0  ;;  %v2463_v26 = vrot.slane %v2438_v1, %v596_v24  ;;  %v2760_v50 = vrot.slane %v2739_v2, %v592_v45  ;;  %v593_v1 = vrot.slane %v4688_v38, %v592_v45 }
 0x1bf   :  { %v2728_v53 = vadd.f32 %v2727_v52, %v2726_v28  ;;  %v2764_v52 = vrot.slane %v2739_v2, %v596_v24  ;;  %v597_v2 = vrot.slane %v4688_v38, %v596_v24 }
 0x22b   :  { %v2283_v58 = vpop.f32.mrb[4].mxu1 }
 0x22c   :  { %v3126_v59 = vadd.f32 %v2283_v58, %v585_v56  ;;  %v2285_v60 = vpop.f32.mrb[5].mxu1 }
 0x22d   :  { %v3127_v61 = vadd.f32 %v2285_v60, %v589_v57  ;;  %v2287_v62 = vpop.f32.mrb[6].mxu1 }
 0x22e   :  { %3620 = vtanh.f32 %v3126_v59  ;;  %v2288_v63 = vpop.f32.mrb[7].mxu1 }
 0x22f   :  { %3622 = vtanh.f32 %v3127_v61 }
 0x237   :  { %v2598_v8 = vpop.f32.mrb[8].mxu1 }
 0x238   :  { %v3621_v10 = vpop.eup %3620  ;;  %v2599_v11 = vadd.f32 %v2598_v8, %v2443_v3  ;;  %v2600_v12 = vpop.f32.mrb[9].mxu1 }
 0x239   :  { %v3623_v13 = vpop.eup %3622  ;;  %v2601_v14 = vadd.f32 %v2600_v12, %v2447_v4  ;;  %v2602_v0 = vpop.f32.mrb[10].mxu1  ;;  %v2721_v16 = vmul.f32 %v3621_v10, %v2700_v5  ;;  %v2712_v10 = vrot.slane %v4698_v22, %v596_v24 }
 0x23a   :  { %v2771_v17 = vmul.f32 %v2744_v6, %v2599_v11  ;;  %v2603_v19 = vpop.f32.mrb[11].mxu1  ;;  %v2722_v20 = vmul.f32 %v3623_v13, %v2704_v7 }
 0x23b   :  { %v2772_v21 = vmul.f32 %v2748_v9, %v2601_v14  ;;  %v2729_v23 = vsel %vm2725_vm5, %v2721_v16, 0.0  ;;  %v2708_v9 = vrot.slane %v4698_v22, %v592_v45 }
 0x23c   :  { %v2777_v25 = vsel %vm2725_vm5, %v2771_v17, 0.0  ;;  %v2730_v27 = vadd.f32 %v2729_v23, %v2728_v53  ;;  %v2731_v29 = vsel %vm2725_vm5, %v2722_v20, 0.0  ;;  %v3120_v20 = vld [vmem:[#allocation3] ss:$0 sm:$0xff] }
 0x23d   :  { %v2778_v30 = vsel %vm2725_vm5, %v2772_v21, 0.0 }
 0x23e   :  { %v2779_v31 = vadd.f32 %v2778_v30, %v2777_v25  ;;  %v2732_v32 = vadd.f32 %v2731_v29, %v2730_v27 }
 0x243   :  { %v2639_v37 = vpop.f32.mrb[12].mxu1 }
 0x244   :  { %v2640_v39 = vadd.f32 %v2639_v37, %v2451_v33  ;;  %v2641_v40 = vpop.f32.mrb[13].mxu1 }
 0x245   :  { %v2642_v41 = vadd.f32 %v2641_v40, %v2455_v34  ;;  %v2643_v42 = vpop.f32.mrb[14].mxu1 }
 0x246   :  { %v2773_v18 = vmul.f32 %v2752_v35, %v2640_v39  ;;  %v2644_v43 = vpop.f32.mrb[15].mxu1 }
 0x247   :  { %v2774_v36 = vmul.f32 %v2756_v15, %v2642_v41 }
 0x248   :  { %v2780_v44 = vsel %vm2725_vm5, %v2773_v18, 0.0 }
 0x249   :  { %v2781_v46 = vadd.f32 %v2780_v44, %v2779_v31  ;;  %v2782_v47 = vsel %vm2725_vm5, %v2774_v36, 0.0 }
 0x24b   :  { %v2783_v48 = vadd.f32 %v2782_v47, %v2781_v46 }
 0x24f   :  { %v2680_v28 = vpop.f32.mrb[16].mxu1 }
 0x250   :  { %v2681_v53 = vadd.f32 %v2680_v28, %v2459_v49  ;;  %v2682_v54 = vpop.f32.mrb[17].mxu1 }
 0x251   :  { %v2683_v55 = vadd.f32 %v2682_v54, %v2463_v26  ;;  %v2684_v56 = vpop.f32.mrb[18].mxu1 }
 0x252   :  { %v2775_v57 = vmul.f32 %v2760_v50, %v2681_v53  ;;  %v2685_v58 = vpop.f32.mrb[19].mxu1 }
 0x253   :  { %v2776_v59 = vmul.f32 %v2764_v52, %v2683_v55 }
 0x254   :  { %v2784_v60 = vsel %vm2725_vm5, %v2775_v57, 0.0 }
 0x255   :  { %v2785_v61 = vadd.f32 %v2784_v60, %v2783_v48  ;;  %v2786_v62 = vsel %vm2725_vm5, %v2776_v59, 0.0 }
 0x257   :  { %v2787_v63 = vadd.f32 %v2786_v62, %v2785_v61 }
 0x259   :  { %2788 = vadd.xlane.f32.xlu1 %v2787_v63 }
 0x26d   :  { %v2406_v3 = vpop.f32.mrb[4].mxu0 }
 0x26e   :  { %v3128_v4 = vadd.f32 %v2406_v3, %v593_v1  ;;  %v2408_v5 = vpop.f32.mrb[5].mxu0 }
 0x26f   :  { %v3129_v6 = vadd.f32 %v2408_v5, %v597_v2  ;;  %v2410_v7 = vpop.f32.mrb[6].mxu0 }
 0x270   :  { %3624 = vtanh.f32 %v3128_v4  ;;  %v2411_v8 = vpop.f32.mrb[7].mxu0 }
 0x271   :  { %3626 = vtanh.f32 %v3129_v6 }
 0x27a   :  { %v3625_v11 = vpop.eup %3624 }
 0x27b   :  { %v3627_v12 = vpop.eup %3626  ;;  %v2723_v13 = vmul.f32 %v3625_v11, %v2708_v9 }
 0x27c   :  { %v2724_v14 = vmul.f32 %v3627_v12, %v2712_v10 }
 0x27d   :  { %v2733_v0 = vsel %vm2725_vm5, %v2723_v13, 0.0 }
 0x27e   :  { %v2734_v16 = vadd.f32 %v2733_v0, %v2732_v32  ;;  %v2735_v38 = vsel %vm2725_vm5, %v2724_v14, 0.0 }
 0x280   :  { %v2736_v17 = vadd.f32 %v2735_v38, %v2734_v16 }
 0x282   :  { %2737 = vadd.xlane.f32.xlu0 %v2736_v17 }
 0x2e6   :  { %v2789_v19 = vpop.xlane.xlu1 %2788 }
 0x30f   :  { %v2738_v21 = vpop.xlane.xlu0 %2737 }
 0x310   :  { %v2790_v23 = vadd.f32 %v2789_v19, %v2738_v21 }
 0x312   :  { %v2798_v25 = vadd.f32 %v3120_v20, %v2790_v23 }
 0x314   :  { %v3121_v27 = vmul.f32 -1.442695, %v2798_v25 }
 0x316   :  { %3628 = vpow2.f32 %v3121_v27 }
 0x320   :  { %v3629_v29 = vpop.eup %3628 }
 0x321   :  { %v2802_v22 = vadd.f32 1.0, %v3629_v29 }
 0x323   :  { %3630 = vrcp.f32 %v2802_v22 }
 0x32d   :  { %v3631_v30 = vpop.eup %3630 }
 0x32e   :  { %2806 = vst.msk [vmem:[%s4748_s10] sm:$0x3] %vm2805_vm6, %v3631_v30 }

</bundles_post_ra>
